<compile_context>
chip_gen: v5e
topology: v5e:2x2
jax: 0.10.0
libtpu: 0.0.40
codegen_flags: <defaults>
</compile_context>

<pallas_src>
import jax
import jax.numpy as jnp
from jax import lax
from jax.experimental import pallas as pl
from jax.experimental.pallas import tpu as pltpu

LANES = 128  # all conv-row activations / weights are padded to one lane tile


# ---------------------------------------------------------------------------
# Fused Pallas kernel (one sample per grid step):
#   conv+ReLU x2 -> dense1 folded over conv rows (ReLU) -> dense(ReLU) -> dense+softmax
# ---------------------------------------------------------------------------
def _fused_cnn_kernel(x_ref, t1_ref, b1_ref, t2_ref, b2_ref,
                      wd1_ref, bd1_ref, wd2_ref, bd2_ref, wd3_ref, bd3_ref,
                      o_ref):
    H = x_ref.shape[1]                 # 16 input rows
    kh1 = t1_ref.shape[0]              # 3
    kh2 = t2_ref.shape[0]              # 3
    ho1 = H - kh1 + 1                  # 14
    ho2 = ho1 - kh2 + 1                # 12 (== wd1_ref.shape[0])

    xb = x_ref[0]                      # (H, 128) lane-padded row-flattened NHWC

    # ---- conv1 + ReLU: kh1 lane-dense (ho1,128)x(128,128) matmuls ------------
    c1 = jnp.dot(xb[0:ho1, :], t1_ref[0], preferred_element_type=jnp.float32)
    for kh in range(1, kh1):
        c1 = c1 + jnp.dot(xb[kh:kh + ho1, :], t1_ref[kh],
                          preferred_element_type=jnp.float32)
    a1 = jnp.maximum(c1 + b1_ref[...], 0.0)          # (ho1, 128), lanes>=112 are 0

    # ---- conv2 + ReLU ---------------------------------------------------------
    c2 = jnp.dot(a1[0:ho2, :], t2_ref[0], preferred_element_type=jnp.float32)
    for kh in range(1, kh2):
        c2 = c2 + jnp.dot(a1[kh:kh + ho2, :], t2_ref[kh],
                          preferred_element_type=jnp.float32)
    a2 = jnp.maximum(c2 + b2_ref[...], 0.0)          # (ho2, 128), lanes>=96 are 0

    # ---- dense1 folded over conv2 rows (no flatten scratch) -------------------
    d1 = jnp.dot(a2[0:1, :], wd1_ref[0], preferred_element_type=jnp.float32)
    for h in range(1, ho2):
        d1 = d1 + jnp.dot(a2[h:h + 1, :], wd1_ref[h],
                          preferred_element_type=jnp.float32)
    h1 = jnp.maximum(d1 + bd1_ref[...], 0.0)         # (1, D1)

    # ---- remaining dense stack: ReLU, Softmax ---------------------------------
    h2 = jnp.maximum(
        jnp.dot(h1, wd2_ref[...], preferred_element_type=jnp.float32)
        + bd2_ref[...], 0.0)                         # (1, D2)
    logits = (jnp.dot(h2, wd3_ref[...], preferred_element_type=jnp.float32)
              + bd3_ref[...])                        # (1, 128), padded lanes ~ -1e30

    z = logits - jnp.max(logits, axis=-1, keepdims=True)
    e = jnp.exp(z)                                   # padded lanes underflow to 0
    p = e / jnp.sum(e, axis=-1, keepdims=True)       # exact normalization
    o_ref[0] = p.astype(o_ref.dtype)


# ---------------------------------------------------------------------------
# Wrapper
# ---------------------------------------------------------------------------
def torch_cnn_forward(x_nchw, kparams, n_classes):
    """Fused intended-TorchCNN forward: conv+ReLU stack -> flatten -> dense stack."""
    (t1, b1, t2, b2, wd1r, bd1, wd2, bd2, wd3, bd3) = kparams
    B, C, H, W = x_nchw.shape
    assert W * C <= LANES, "toy-size kernel: row-flattened input must fit one lane tile"
    # One tiny host-side layout change: NCHW -> row-flattened NHWC, lane-padded.
    x_rows = jnp.transpose(x_nchw, (0, 2, 3, 1)).reshape(B, H, W * C)
    x_pad = jnp.pad(x_rows, ((0, 0), (0, 0), (0, LANES - W * C)))

    args = (x_pad, t1, b1, t2, b2, wd1r, bd1, wd2, bd2, wd3, bd3)

    def _const_spec(shape):
        nd = len(shape)
        return pl.BlockSpec(shape, lambda b, _nd=nd: (0,) * _nd)   # weights: fetched once

    in_specs = ([pl.BlockSpec((1, H, LANES), lambda b: (b, 0, 0))]
                + [_const_spec(a.shape) for a in args[1:]])

    out_full = pl.pallas_call(
        _fused_cnn_kernel,
        out_shape=jax.ShapeDtypeStruct((B, 1, LANES), jnp.float32),
        grid=(B,),                                   # one sample per step; 2 TCs on v7x
        in_specs=in_specs,
        out_specs=pl.BlockSpec((1, 1, LANES), lambda b: (b, 0, 0)),
        compiler_params=pltpu.CompilerParams(
            dimension_semantics=("parallel",),
            # ~0.7 MiB of weights + per-sample blocks; re-derive for scaled configs
            # (Toeplitz fold blows up O(W*Wo*Cin*Cout); v7x VMEM is 64 MiB/TC).
            vmem_limit_bytes=32 * 1024 * 1024),
    )(*args)
    return out_full.reshape(B, LANES)[:, :n_classes]


# ---------------------------------------------------------------------------
# Parameters: PyTorch layout -> kernel layout (all host-side, init-time, free)
# ---------------------------------------------------------------------------
def make_torch_style_params(key, in_channels, conv_channels, spatial,
                            dense_sizes, n_classes, k=3):
    """Random params laid out exactly like the PyTorch module's:
    Conv2d weight (Cout,Cin,KH,KW) + bias (Cout,); Linear weight (out,in) + bias (out,)."""
    params = {"conv": [], "dense": []}
    h = w = spatial
    cin = in_channels
    for cout in conv_channels:
        key, k1, k2 = jax.random.split(key, 3)
        bound = float(cin * k * k) ** -0.5
        params["conv"].append((
            jax.random.uniform(k1, (cout, cin, k, k), jnp.float32, -bound, bound),
            jax.random.uniform(k2, (cout,), jnp.float32, -bound, bound)))
        cin = cout
        h, w = h - k + 1, w - k + 1
    flat = cin * h * w                       # PyTorch CHW flatten size
    sizes = [flat, *dense_sizes, n_classes]
    for fin, fout in zip(sizes[:-1], sizes[1:]):
        key, k1, k2 = jax.random.split(key, 3)
        bound = float(fin) ** -0.5
        params["dense"].append((
            jax.random.uniform(k1, (fout, fin), jnp.float32, -bound, bound),
            jax.random.uniform(k2, (fout,), jnp.float32, -bound, bound)))
    return params


def _conv_to_row_toeplitz(w_oihw, w_in):
    """Fold the (KW, Cin) part of a valid stride-1 conv into a Toeplitz-along-W
    weight T of shape (KH, W_in*Cin, Wo*Cout) so that, with activations in
    row-flattened NHWC form a[b, h, iw*Cin + ci]:
        conv_out[b, oh, ow*Cout + co] = sum_kh  a[b, oh+kh, :] @ T[kh]
    """
    cout, cin, khd, kwd = w_oihw.shape
    wo = w_in - kwd + 1
    iw = jnp.arange(w_in)[:, None, None, None]
    ci = jnp.arange(cin)[None, :, None, None]
    ow = jnp.arange(wo)[None, None, :, None]
    co = jnp.arange(cout)[None, None, None, :]
    kw = iw - ow
    valid = (kw >= 0) & (kw < kwd)
    kw_c = jnp.clip(kw, 0, kwd - 1)
    blocks = []
    for kh in range(khd):
        vals = w_oihw[co, ci, kh, kw_c]              # (W_in, Cin, Wo, Cout)
        vals = jnp.where(valid, vals, 0.0)
        blocks.append(vals.reshape(w_in * cin, wo * cout))
    return jnp.stack(blocks, axis=0)


def prepare_kernel_params(tparams, in_channels, spatial, n_classes):
    """One-time host-side conversion:
      * row-Toeplitz conv weights and tiled row biases, zero-padded to 128 lanes,
      * dense1 weight reshaped/permuted from PyTorch CHW flatten order into a
        per-conv-row (Ho2, 128, D1) weight (flatten is folded into dense1),
      * remaining dense weights transposed; the last one padded to a 128-lane
        class slab with -1e30 bias on the padded logits so softmax ignores them.
    Specialized to the 2-conv / 3-dense architecture used below."""
    h = w = spatial
    cin = in_channels
    kp = []
    for (wc, bc) in tparams["conv"]:
        cout, _, khd, kwd = wc.shape
        wo = w - kwd + 1
        assert w * cin <= LANES and wo * cout <= LANES, \
            "toy-size kernel: conv row-flattened widths must fit one lane tile"
        t = _conv_to_row_toeplitz(wc, w)                           # (KH, w*cin, wo*cout)
        t = jnp.pad(t, ((0, 0), (0, LANES - w * cin), (0, LANES - wo * cout)))
        brow = jnp.pad(jnp.tile(bc, (wo,)), (0, LANES - wo * cout)).reshape(1, LANES)
        kp.extend([t, brow])
        cin = cout
        h, w = h - khd + 1, w - kwd + 1
    c2, ho2, wo2 = cin, h, w

    dense = tparams["dense"]
    # dense1: (D1, C2*Ho2*Wo2) CHW-flatten -> per-row HWC weight (Ho2, Wo2*C2->128, D1)
    wd1, bd1 = dense[0]
    d1 = wd1.shape[0]
    wr = (wd1.T.reshape(c2, ho2, wo2, d1)
             .transpose(1, 2, 0, 3)
             .reshape(ho2, wo2 * c2, d1))
    wr = jnp.pad(wr, ((0, 0), (0, LANES - wo2 * c2), (0, 0)))
    kp.extend([wr, bd1.reshape(1, -1)])
    # middle dense layers (plain transposed Linear weights)
    for (wd, bd) in dense[1:-1]:
        kp.extend([wd.T, bd.reshape(1, -1)])
    # final dense layer: pad class dim to a full lane tile; padded logits -> -1e30
    wlast, blast = dense[-1]
    w3 = jnp.pad(wlast.T, ((0, 0), (0, LANES - n_classes)))
    b3 = jnp.concatenate(
        [blast, jnp.full((LANES - n_classes,), -1e30, jnp.float32)]).reshape(1, LANES)
    kp.extend([w3, b3])
    return tuple(kp)


# ---------------------------------------------------------------------------
# Pure-JAX reference of the intended PyTorch semantics (correctness check)
# ---------------------------------------------------------------------------
def reference_forward(x_nchw, tparams):
    hp = lax.Precision.HIGHEST
    x = x_nchw
    for (w, b) in tparams["conv"]:
        x = lax.conv_general_dilated(x, w, window_strides=(1, 1), padding="VALID",
                                     dimension_numbers=("NCHW", "OIHW", "NCHW"),
                                     precision=hp)
        x = jnp.maximum(x + b[None, :, None, None], 0.0)
    x = x.reshape(x.shape[0], -1)                     # CHW flatten, like PyTorch
    n = len(tparams["dense"])
    for i, (w, b) in enumerate(tparams["dense"]):
        x = jnp.dot(x, w.T, precision=hp) + b
        x = jax.nn.softmax(x, axis=-1) if i == n - 1 else jnp.maximum(x, 0.0)
    return x


if __name__ == "__main__":
    key = jax.random.PRNGKey(0)
    kx, kp = jax.random.split(key)

    # Small shapes consistent with the module: batch=2, channels=4, spatial=16.
    B, C, H, W = 2, 4, 16, 16
    conv_channels = [8, 8]        # scaled-down analogue of [128, 64, 32]
    dense_sizes = [32, 16]        # scaled-down analogue of [256, 128, 64, 32]
    n_classes = 10

    x = jax.random.normal(kx, (B, C, H, W), jnp.float32)   # NCHW, like PyTorch
    tparams = make_torch_style_params(kp, C, conv_channels, H, dense_sizes, n_classes)
    kparams = prepare_kernel_params(tparams, C, H, n_classes)

    out = jax.block_until_ready(torch_cnn_forward(x, kparams, n_classes))

    assert out.shape == (B, n_classes)
    assert bool(jnp.all(jnp.isfinite(out)))
    # Exact softmax normalization in-kernel -> tight row-sum check.
    assert bool(jnp.allclose(jnp.sum(out, axis=-1), 1.0, atol=1e-5))
    # Matches the intended conv -> flatten(CHW) -> dense PyTorch semantics.
    ref = jax.block_until_ready(reference_forward(x, tparams))
    assert bool(jnp.allclose(out, ref, atol=1e-4))
    print("KERNEL_OK")
</pallas_src>

<mosaic_0001>
module attributes {stable_mosaic.version = 11 : i64} {
  func.func @_fused_cnn_kernel(%arg0: i32, %arg1: memref<1x16x128xf32, #tpu.memory_space<vmem>>, %arg2: memref<3x128x128xf32, #tpu.memory_space<vmem>>, %arg3: memref<1x128xf32, #tpu.memory_space<vmem>>, %arg4: memref<3x128x128xf32, #tpu.memory_space<vmem>>, %arg5: memref<1x128xf32, #tpu.memory_space<vmem>>, %arg6: memref<12x128x32xf32, #tpu.memory_space<vmem>>, %arg7: memref<1x32xf32, #tpu.memory_space<vmem>>, %arg8: memref<32x16xf32, #tpu.memory_space<vmem>>, %arg9: memref<1x16xf32, #tpu.memory_space<vmem>>, %arg10: memref<16x128xf32, #tpu.memory_space<vmem>>, %arg11: memref<1x128xf32, #tpu.memory_space<vmem>>, %arg12: memref<1x1x128xf32, #tpu.memory_space<vmem>>) attributes {dimension_semantics = [#tpu.dimension_semantics<parallel>], iteration_bounds = array<i64: 2>, scalar_prefetch = 0 : i64, scratch_operands = 0 : i64, tpu.core_type = #tpu.core_type<tc>, window_params = [{transform_indices = @transform_0, window_bounds = array<i64: 1, 16, 128>}, {pipeline_mode = #tpu.pipeline_mode<synchronous>, transform_indices = @transform_1, window_bounds = array<i64: 3, 128, 128>}, {pipeline_mode = #tpu.pipeline_mode<synchronous>, transform_indices = @transform_2, window_bounds = array<i64: 1, 128>}, {pipeline_mode = #tpu.pipeline_mode<synchronous>, transform_indices = @transform_3, window_bounds = array<i64: 3, 128, 128>}, {pipeline_mode = #tpu.pipeline_mode<synchronous>, transform_indices = @transform_4, window_bounds = array<i64: 1, 128>}, {pipeline_mode = #tpu.pipeline_mode<synchronous>, transform_indices = @transform_5, window_bounds = array<i64: 12, 128, 32>}, {pipeline_mode = #tpu.pipeline_mode<synchronous>, transform_indices = @transform_6, window_bounds = array<i64: 1, 32>}, {pipeline_mode = #tpu.pipeline_mode<synchronous>, transform_indices = @transform_7, window_bounds = array<i64: 32, 16>}, {pipeline_mode = #tpu.pipeline_mode<synchronous>, transform_indices = @transform_8, window_bounds = array<i64: 1, 16>}, {pipeline_mode = #tpu.pipeline_mode<synchronous>, transform_indices = @transform_9, window_bounds = array<i64: 16, 128>}, {pipeline_mode = #tpu.pipeline_mode<synchronous>, transform_indices = @transform_10, window_bounds = array<i64: 1, 128>}, {transform_indices = @transform_11, window_bounds = array<i64: 1, 1, 128>}]} {
    %c0 = arith.constant 0 : index
    %c0_0 = arith.constant 0 : index
    %c0_1 = arith.constant 0 : index
    %0 = vector.load %arg1[%c0, %c0_0, %c0_1] : memref<1x16x128xf32, #tpu.memory_space<vmem>>, vector<1x16x128xf32>
    %1 = vector.shape_cast %0 : vector<1x16x128xf32> to vector<16x128xf32>
    %2 = vector.extract_strided_slice %1 {offsets = [0, 0], sizes = [14, 128], strides = [1, 1]} : vector<16x128xf32> to vector<14x128xf32>
    %c0_2 = arith.constant 0 : index
    %c0_3 = arith.constant 0 : index
    %c0_4 = arith.constant 0 : index
    %3 = vector.load %arg2[%c0_2, %c0_3, %c0_4] : memref<3x128x128xf32, #tpu.memory_space<vmem>>, vector<1x128x128xf32>
    %4 = vector.shape_cast %3 : vector<1x128x128xf32> to vector<128x128xf32>
    %cst = arith.constant dense<0.000000e+00> : vector<14x128xf32>
    %5 = tpu.matmul %2, %4, %cst {dimension_numbers = #tpu.dot_dimension_numbers<[1], [0], [0], [1], [0, 0, 1, 1], [], []>} : vector<14x128xf32>, vector<128x128xf32>, vector<14x128xf32> -> vector<14x128xf32>
    %6 = vector.extract_strided_slice %1 {offsets = [1, 0], sizes = [14, 128], strides = [1, 1]} : vector<16x128xf32> to vector<14x128xf32>
    %c1 = arith.constant 1 : index
    %c0_5 = arith.constant 0 : index
    %c0_6 = arith.constant 0 : index
    %7 = vector.load %arg2[%c1, %c0_5, %c0_6] : memref<3x128x128xf32, #tpu.memory_space<vmem>>, vector<1x128x128xf32>
    %8 = vector.shape_cast %7 : vector<1x128x128xf32> to vector<128x128xf32>
    %cst_7 = arith.constant dense<0.000000e+00> : vector<14x128xf32>
    %9 = tpu.matmul %6, %8, %cst_7 {dimension_numbers = #tpu.dot_dimension_numbers<[1], [0], [0], [1], [0, 0, 1, 1], [], []>} : vector<14x128xf32>, vector<128x128xf32>, vector<14x128xf32> -> vector<14x128xf32>
    %10 = arith.addf %5, %9 : vector<14x128xf32>
    %11 = vector.extract_strided_slice %1 {offsets = [2, 0], sizes = [14, 128], strides = [1, 1]} : vector<16x128xf32> to vector<14x128xf32>
    %c2 = arith.constant 2 : index
    %c0_8 = arith.constant 0 : index
    %c0_9 = arith.constant 0 : index
    %12 = vector.load %arg2[%c2, %c0_8, %c0_9] : memref<3x128x128xf32, #tpu.memory_space<vmem>>, vector<1x128x128xf32>
    %13 = vector.shape_cast %12 : vector<1x128x128xf32> to vector<128x128xf32>
    %cst_10 = arith.constant dense<0.000000e+00> : vector<14x128xf32>
    %14 = tpu.matmul %11, %13, %cst_10 {dimension_numbers = #tpu.dot_dimension_numbers<[1], [0], [0], [1], [0, 0, 1, 1], [], []>} : vector<14x128xf32>, vector<128x128xf32>, vector<14x128xf32> -> vector<14x128xf32>
    %15 = arith.addf %10, %14 : vector<14x128xf32>
    %c0_11 = arith.constant 0 : index
    %c0_12 = arith.constant 0 : index
    %16 = vector.load %arg3[%c0_11, %c0_12] : memref<1x128xf32, #tpu.memory_space<vmem>>, vector<1x128xf32>
    %17 = vector.broadcast %16 : vector<1x128xf32> to vector<14x128xf32>
    %18 = arith.addf %15, %17 : vector<14x128xf32>
    %cst_13 = arith.constant 0.000000e+00 : f32
    %19 = vector.broadcast %cst_13 : f32 to vector<14x128xf32>
    %20 = arith.maximumf %18, %19 : vector<14x128xf32>
    %21 = vector.extract_strided_slice %20 {offsets = [0, 0], sizes = [12, 128], strides = [1, 1]} : vector<14x128xf32> to vector<12x128xf32>
    %c0_14 = arith.constant 0 : index
    %c0_15 = arith.constant 0 : index
    %c0_16 = arith.constant 0 : index
    %22 = vector.load %arg4[%c0_14, %c0_15, %c0_16] : memref<3x128x128xf32, #tpu.memory_space<vmem>>, vector<1x128x128xf32>
    %23 = vector.shape_cast %22 : vector<1x128x128xf32> to vector<128x128xf32>
    %cst_17 = arith.constant dense<0.000000e+00> : vector<12x128xf32>
    %24 = tpu.matmul %21, %23, %cst_17 {dimension_numbers = #tpu.dot_dimension_numbers<[1], [0], [0], [1], [0, 0, 1, 1], [], []>} : vector<12x128xf32>, vector<128x128xf32>, vector<12x128xf32> -> vector<12x128xf32>
    %25 = vector.extract_strided_slice %20 {offsets = [1, 0], sizes = [12, 128], strides = [1, 1]} : vector<14x128xf32> to vector<12x128xf32>
    %c1_18 = arith.constant 1 : index
    %c0_19 = arith.constant 0 : index
    %c0_20 = arith.constant 0 : index
    %26 = vector.load %arg4[%c1_18, %c0_19, %c0_20] : memref<3x128x128xf32, #tpu.memory_space<vmem>>, vector<1x128x128xf32>
    %27 = vector.shape_cast %26 : vector<1x128x128xf32> to vector<128x128xf32>
    %cst_21 = arith.constant dense<0.000000e+00> : vector<12x128xf32>
    %28 = tpu.matmul %25, %27, %cst_21 {dimension_numbers = #tpu.dot_dimension_numbers<[1], [0], [0], [1], [0, 0, 1, 1], [], []>} : vector<12x128xf32>, vector<128x128xf32>, vector<12x128xf32> -> vector<12x128xf32>
    %29 = arith.addf %24, %28 : vector<12x128xf32>
    %30 = vector.extract_strided_slice %20 {offsets = [2, 0], sizes = [12, 128], strides = [1, 1]} : vector<14x128xf32> to vector<12x128xf32>
    %c2_22 = arith.constant 2 : index
    %c0_23 = arith.constant 0 : index
    %c0_24 = arith.constant 0 : index
    %31 = vector.load %arg4[%c2_22, %c0_23, %c0_24] : memref<3x128x128xf32, #tpu.memory_space<vmem>>, vector<1x128x128xf32>
    %32 = vector.shape_cast %31 : vector<1x128x128xf32> to vector<128x128xf32>
    %cst_25 = arith.constant dense<0.000000e+00> : vector<12x128xf32>
    %33 = tpu.matmul %30, %32, %cst_25 {dimension_numbers = #tpu.dot_dimension_numbers<[1], [0], [0], [1], [0, 0, 1, 1], [], []>} : vector<12x128xf32>, vector<128x128xf32>, vector<12x128xf32> -> vector<12x128xf32>
    %34 = arith.addf %29, %33 : vector<12x128xf32>
    %c0_26 = arith.constant 0 : index
    %c0_27 = arith.constant 0 : index
    %35 = vector.load %arg5[%c0_26, %c0_27] : memref<1x128xf32, #tpu.memory_space<vmem>>, vector<1x128xf32>
    %36 = vector.broadcast %35 : vector<1x128xf32> to vector<12x128xf32>
    %37 = arith.addf %34, %36 : vector<12x128xf32>
    %cst_28 = arith.constant 0.000000e+00 : f32
    %38 = vector.broadcast %cst_28 : f32 to vector<12x128xf32>
    %39 = arith.maximumf %37, %38 : vector<12x128xf32>
    %40 = vector.extract_strided_slice %39 {offsets = [0, 0], sizes = [1, 128], strides = [1, 1]} : vector<12x128xf32> to vector<1x128xf32>
    %c0_29 = arith.constant 0 : index
    %c0_30 = arith.constant 0 : index
    %c0_31 = arith.constant 0 : index
    %41 = vector.load %arg6[%c0_29, %c0_30, %c0_31] : memref<12x128x32xf32, #tpu.memory_space<vmem>>, vector<1x128x32xf32>
    %42 = vector.shape_cast %41 : vector<1x128x32xf32> to vector<128x32xf32>
    %cst_32 = arith.constant dense<0.000000e+00> : vector<1x32xf32>
    %43 = tpu.matmul %40, %42, %cst_32 {dimension_numbers = #tpu.dot_dimension_numbers<[1], [0], [0], [1], [0, 0, 1, 1], [], []>} : vector<1x128xf32>, vector<128x32xf32>, vector<1x32xf32> -> vector<1x32xf32>
    %44 = vector.extract_strided_slice %39 {offsets = [1, 0], sizes = [1, 128], strides = [1, 1]} : vector<12x128xf32> to vector<1x128xf32>
    %c1_33 = arith.constant 1 : index
    %c0_34 = arith.constant 0 : index
    %c0_35 = arith.constant 0 : index
    %45 = vector.load %arg6[%c1_33, %c0_34, %c0_35] : memref<12x128x32xf32, #tpu.memory_space<vmem>>, vector<1x128x32xf32>
    %46 = vector.shape_cast %45 : vector<1x128x32xf32> to vector<128x32xf32>
    %cst_36 = arith.constant dense<0.000000e+00> : vector<1x32xf32>
    %47 = tpu.matmul %44, %46, %cst_36 {dimension_numbers = #tpu.dot_dimension_numbers<[1], [0], [0], [1], [0, 0, 1, 1], [], []>} : vector<1x128xf32>, vector<128x32xf32>, vector<1x32xf32> -> vector<1x32xf32>
    %48 = arith.addf %43, %47 : vector<1x32xf32>
    %49 = vector.extract_strided_slice %39 {offsets = [2, 0], sizes = [1, 128], strides = [1, 1]} : vector<12x128xf32> to vector<1x128xf32>
    %c2_37 = arith.constant 2 : index
    %c0_38 = arith.constant 0 : index
    %c0_39 = arith.constant 0 : index
    %50 = vector.load %arg6[%c2_37, %c0_38, %c0_39] : memref<12x128x32xf32, #tpu.memory_space<vmem>>, vector<1x128x32xf32>
    %51 = vector.shape_cast %50 : vector<1x128x32xf32> to vector<128x32xf32>
    %cst_40 = arith.constant dense<0.000000e+00> : vector<1x32xf32>
    %52 = tpu.matmul %49, %51, %cst_40 {dimension_numbers = #tpu.dot_dimension_numbers<[1], [0], [0], [1], [0, 0, 1, 1], [], []>} : vector<1x128xf32>, vector<128x32xf32>, vector<1x32xf32> -> vector<1x32xf32>
    %53 = arith.addf %48, %52 : vector<1x32xf32>
    %54 = vector.extract_strided_slice %39 {offsets = [3, 0], sizes = [1, 128], strides = [1, 1]} : vector<12x128xf32> to vector<1x128xf32>
    %c3 = arith.constant 3 : index
    %c0_41 = arith.constant 0 : index
    %c0_42 = arith.constant 0 : index
    %55 = vector.load %arg6[%c3, %c0_41, %c0_42] : memref<12x128x32xf32, #tpu.memory_space<vmem>>, vector<1x128x32xf32>
    %56 = vector.shape_cast %55 : vector<1x128x32xf32> to vector<128x32xf32>
    %cst_43 = arith.constant dense<0.000000e+00> : vector<1x32xf32>
    %57 = tpu.matmul %54, %56, %cst_43 {dimension_numbers = #tpu.dot_dimension_numbers<[1], [0], [0], [1], [0, 0, 1, 1], [], []>} : vector<1x128xf32>, vector<128x32xf32>, vector<1x32xf32> -> vector<1x32xf32>
    %58 = arith.addf %53, %57 : vector<1x32xf32>
    %59 = vector.extract_strided_slice %39 {offsets = [4, 0], sizes = [1, 128], strides = [1, 1]} : vector<12x128xf32> to vector<1x128xf32>
    %c4 = arith.constant 4 : index
    %c0_44 = arith.constant 0 : index
    %c0_45 = arith.constant 0 : index
    %60 = vector.load %arg6[%c4, %c0_44, %c0_45] : memref<12x128x32xf32, #tpu.memory_space<vmem>>, vector<1x128x32xf32>
    %61 = vector.shape_cast %60 : vector<1x128x32xf32> to vector<128x32xf32>
    %cst_46 = arith.constant dense<0.000000e+00> : vector<1x32xf32>
    %62 = tpu.matmul %59, %61, %cst_46 {dimension_numbers = #tpu.dot_dimension_numbers<[1], [0], [0], [1], [0, 0, 1, 1], [], []>} : vector<1x128xf32>, vector<128x32xf32>, vector<1x32xf32> -> vector<1x32xf32>
    %63 = arith.addf %58, %62 : vector<1x32xf32>
    %64 = vector.extract_strided_slice %39 {offsets = [5, 0], sizes = [1, 128], strides = [1, 1]} : vector<12x128xf32> to vector<1x128xf32>
    %c5 = arith.constant 5 : index
    %c0_47 = arith.constant 0 : index
    %c0_48 = arith.constant 0 : index
    %65 = vector.load %arg6[%c5, %c0_47, %c0_48] : memref<12x128x32xf32, #tpu.memory_space<vmem>>, vector<1x128x32xf32>
    %66 = vector.shape_cast %65 : vector<1x128x32xf32> to vector<128x32xf32>
    %cst_49 = arith.constant dense<0.000000e+00> : vector<1x32xf32>
    %67 = tpu.matmul %64, %66, %cst_49 {dimension_numbers = #tpu.dot_dimension_numbers<[1], [0], [0], [1], [0, 0, 1, 1], [], []>} : vector<1x128xf32>, vector<128x32xf32>, vector<1x32xf32> -> vector<1x32xf32>
    %68 = arith.addf %63, %67 : vector<1x32xf32>
    %69 = vector.extract_strided_slice %39 {offsets = [6, 0], sizes = [1, 128], strides = [1, 1]} : vector<12x128xf32> to vector<1x128xf32>
    %c6 = arith.constant 6 : index
    %c0_50 = arith.constant 0 : index
    %c0_51 = arith.constant 0 : index
    %70 = vector.load %arg6[%c6, %c0_50, %c0_51] : memref<12x128x32xf32, #tpu.memory_space<vmem>>, vector<1x128x32xf32>
    %71 = vector.shape_cast %70 : vector<1x128x32xf32> to vector<128x32xf32>
    %cst_52 = arith.constant dense<0.000000e+00> : vector<1x32xf32>
    %72 = tpu.matmul %69, %71, %cst_52 {dimension_numbers = #tpu.dot_dimension_numbers<[1], [0], [0], [1], [0, 0, 1, 1], [], []>} : vector<1x128xf32>, vector<128x32xf32>, vector<1x32xf32> -> vector<1x32xf32>
    %73 = arith.addf %68, %72 : vector<1x32xf32>
    %74 = vector.extract_strided_slice %39 {offsets = [7, 0], sizes = [1, 128], strides = [1, 1]} : vector<12x128xf32> to vector<1x128xf32>
    %c7 = arith.constant 7 : index
    %c0_53 = arith.constant 0 : index
    %c0_54 = arith.constant 0 : index
    %75 = vector.load %arg6[%c7, %c0_53, %c0_54] : memref<12x128x32xf32, #tpu.memory_space<vmem>>, vector<1x128x32xf32>
    %76 = vector.shape_cast %75 : vector<1x128x32xf32> to vector<128x32xf32>
    %cst_55 = arith.constant dense<0.000000e+00> : vector<1x32xf32>
    %77 = tpu.matmul %74, %76, %cst_55 {dimension_numbers = #tpu.dot_dimension_numbers<[1], [0], [0], [1], [0, 0, 1, 1], [], []>} : vector<1x128xf32>, vector<128x32xf32>, vector<1x32xf32> -> vector<1x32xf32>
    %78 = arith.addf %73, %77 : vector<1x32xf32>
    %79 = vector.extract_strided_slice %39 {offsets = [8, 0], sizes = [1, 128], strides = [1, 1]} : vector<12x128xf32> to vector<1x128xf32>
    %c8 = arith.constant 8 : index
    %c0_56 = arith.constant 0 : index
    %c0_57 = arith.constant 0 : index
    %80 = vector.load %arg6[%c8, %c0_56, %c0_57] : memref<12x128x32xf32, #tpu.memory_space<vmem>>, vector<1x128x32xf32>
    %81 = vector.shape_cast %80 : vector<1x128x32xf32> to vector<128x32xf32>
    %cst_58 = arith.constant dense<0.000000e+00> : vector<1x32xf32>
    %82 = tpu.matmul %79, %81, %cst_58 {dimension_numbers = #tpu.dot_dimension_numbers<[1], [0], [0], [1], [0, 0, 1, 1], [], []>} : vector<1x128xf32>, vector<128x32xf32>, vector<1x32xf32> -> vector<1x32xf32>
    %83 = arith.addf %78, %82 : vector<1x32xf32>
    %84 = vector.extract_strided_slice %39 {offsets = [9, 0], sizes = [1, 128], strides = [1, 1]} : vector<12x128xf32> to vector<1x128xf32>
    %c9 = arith.constant 9 : index
    %c0_59 = arith.constant 0 : index
    %c0_60 = arith.constant 0 : index
    %85 = vector.load %arg6[%c9, %c0_59, %c0_60] : memref<12x128x32xf32, #tpu.memory_space<vmem>>, vector<1x128x32xf32>
    %86 = vector.shape_cast %85 : vector<1x128x32xf32> to vector<128x32xf32>
    %cst_61 = arith.constant dense<0.000000e+00> : vector<1x32xf32>
    %87 = tpu.matmul %84, %86, %cst_61 {dimension_numbers = #tpu.dot_dimension_numbers<[1], [0], [0], [1], [0, 0, 1, 1], [], []>} : vector<1x128xf32>, vector<128x32xf32>, vector<1x32xf32> -> vector<1x32xf32>
    %88 = arith.addf %83, %87 : vector<1x32xf32>
    %89 = vector.extract_strided_slice %39 {offsets = [10, 0], sizes = [1, 128], strides = [1, 1]} : vector<12x128xf32> to vector<1x128xf32>
    %c10 = arith.constant 10 : index
    %c0_62 = arith.constant 0 : index
    %c0_63 = arith.constant 0 : index
    %90 = vector.load %arg6[%c10, %c0_62, %c0_63] : memref<12x128x32xf32, #tpu.memory_space<vmem>>, vector<1x128x32xf32>
    %91 = vector.shape_cast %90 : vector<1x128x32xf32> to vector<128x32xf32>
    %cst_64 = arith.constant dense<0.000000e+00> : vector<1x32xf32>
    %92 = tpu.matmul %89, %91, %cst_64 {dimension_numbers = #tpu.dot_dimension_numbers<[1], [0], [0], [1], [0, 0, 1, 1], [], []>} : vector<1x128xf32>, vector<128x32xf32>, vector<1x32xf32> -> vector<1x32xf32>
    %93 = arith.addf %88, %92 : vector<1x32xf32>
    %94 = vector.extract_strided_slice %39 {offsets = [11, 0], sizes = [1, 128], strides = [1, 1]} : vector<12x128xf32> to vector<1x128xf32>
    %c11 = arith.constant 11 : index
    %c0_65 = arith.constant 0 : index
    %c0_66 = arith.constant 0 : index
    %95 = vector.load %arg6[%c11, %c0_65, %c0_66] : memref<12x128x32xf32, #tpu.memory_space<vmem>>, vector<1x128x32xf32>
    %96 = vector.shape_cast %95 : vector<1x128x32xf32> to vector<128x32xf32>
    %cst_67 = arith.constant dense<0.000000e+00> : vector<1x32xf32>
    %97 = tpu.matmul %94, %96, %cst_67 {dimension_numbers = #tpu.dot_dimension_numbers<[1], [0], [0], [1], [0, 0, 1, 1], [], []>} : vector<1x128xf32>, vector<128x32xf32>, vector<1x32xf32> -> vector<1x32xf32>
    %98 = arith.addf %93, %97 : vector<1x32xf32>
    %c0_68 = arith.constant 0 : index
    %c0_69 = arith.constant 0 : index
    %99 = vector.load %arg7[%c0_68, %c0_69] : memref<1x32xf32, #tpu.memory_space<vmem>>, vector<1x32xf32>
    %100 = arith.addf %98, %99 : vector<1x32xf32>
    %cst_70 = arith.constant 0.000000e+00 : f32
    %101 = vector.broadcast %cst_70 : f32 to vector<1x32xf32>
    %102 = arith.maximumf %100, %101 : vector<1x32xf32>
    %c0_71 = arith.constant 0 : index
    %c0_72 = arith.constant 0 : index
    %103 = vector.load %arg8[%c0_71, %c0_72] : memref<32x16xf32, #tpu.memory_space<vmem>>, vector<32x16xf32>
    %cst_73 = arith.constant dense<0.000000e+00> : vector<1x16xf32>
    %104 = tpu.matmul %102, %103, %cst_73 {dimension_numbers = #tpu.dot_dimension_numbers<[1], [0], [0], [1], [0, 0, 1, 1], [], []>} : vector<1x32xf32>, vector<32x16xf32>, vector<1x16xf32> -> vector<1x16xf32>
    %c0_74 = arith.constant 0 : index
    %c0_75 = arith.constant 0 : index
    %105 = vector.load %arg9[%c0_74, %c0_75] : memref<1x16xf32, #tpu.memory_space<vmem>>, vector<1x16xf32>
    %106 = arith.addf %104, %105 : vector<1x16xf32>
    %cst_76 = arith.constant 0.000000e+00 : f32
    %107 = vector.broadcast %cst_76 : f32 to vector<1x16xf32>
    %108 = arith.maximumf %106, %107 : vector<1x16xf32>
    %c0_77 = arith.constant 0 : index
    %c0_78 = arith.constant 0 : index
    %109 = vector.load %arg10[%c0_77, %c0_78] : memref<16x128xf32, #tpu.memory_space<vmem>>, vector<16x128xf32>
    %cst_79 = arith.constant dense<0.000000e+00> : vector<1x128xf32>
    %110 = tpu.matmul %108, %109, %cst_79 {dimension_numbers = #tpu.dot_dimension_numbers<[1], [0], [0], [1], [0, 0, 1, 1], [], []>} : vector<1x16xf32>, vector<16x128xf32>, vector<1x128xf32> -> vector<1x128xf32>
    %c0_80 = arith.constant 0 : index
    %c0_81 = arith.constant 0 : index
    %111 = vector.load %arg11[%c0_80, %c0_81] : memref<1x128xf32, #tpu.memory_space<vmem>>, vector<1x128xf32>
    %112 = arith.addf %110, %111 : vector<1x128xf32>
    %cst_82 = arith.constant dense<0xFF800000> : vector<1xf32>
    %113 = vector.multi_reduction <maximumf>, %112, %cst_82 [1] : vector<1x128xf32> to vector<1xf32>
    %114 = vector.shape_cast %113 : vector<1xf32> to vector<1x1xf32>
    %115 = vector.broadcast %114 : vector<1x1xf32> to vector<1x128xf32>
    %116 = arith.subf %112, %115 : vector<1x128xf32>
    %117 = math.exp %116 : vector<1x128xf32>
    %cst_83 = arith.constant dense<0.000000e+00> : vector<1xf32>
    %118 = vector.multi_reduction <add>, %117, %cst_83 [1] : vector<1x128xf32> to vector<1xf32>
    %119 = vector.shape_cast %118 : vector<1xf32> to vector<1x1xf32>
    %120 = vector.broadcast %119 : vector<1x1xf32> to vector<1x128xf32>
    %121 = arith.divf %117, %120 : vector<1x128xf32>
    %c0_84 = arith.constant 0 : index
    %c0_85 = arith.constant 0 : index
    %c0_86 = arith.constant 0 : index
    %122 = vector.load %arg12[%c0_84, %c0_85, %c0_86] : memref<1x1x128xf32, #tpu.memory_space<vmem>>, vector<1x1x128xf32>
    %123 = vector.shape_cast %122 : vector<1x1x128xf32> to vector<1x128xf32>
    %124 = vector.shape_cast %121 : vector<1x128xf32> to vector<1x1x128xf32>
    tpu.vector_store %arg12[%c0_84, %c0_85, %c0_86], %124 {strides = array<i32>} : memref<1x1x128xf32, #tpu.memory_space<vmem>>, vector<1x1x128xf32>,
    return
  }
  func.func @transform_0(%arg0: i32) -> (i32, i32, i32) {
    %c0_i32 = arith.constant 0 : i32
    %c0_i32_0 = arith.constant 0 : i32
    %c0_i32_1 = arith.constant 0 : i32
    return %arg0, %c0_i32, %c0_i32_0 : i32, i32, i32
  }
  func.func @transform_1(%arg0: i32) -> (i32, i32, i32) {
    %c0_i32 = arith.constant 0 : i32
    %c0_i32_0 = arith.constant 0 : i32
    %c0_i32_1 = arith.constant 0 : i32
    %c0_i32_2 = arith.constant 0 : i32
    return %c0_i32, %c0_i32_0, %c0_i32_1 : i32, i32, i32
  }
  func.func @transform_2(%arg0: i32) -> (i32, i32) {
    %c0_i32 = arith.constant 0 : i32
    %c0_i32_0 = arith.constant 0 : i32
    %c0_i32_1 = arith.constant 0 : i32
    return %c0_i32, %c0_i32_0 : i32, i32
  }
  func.func @transform_3(%arg0: i32) -> (i32, i32, i32) {
    %c0_i32 = arith.constant 0 : i32
    %c0_i32_0 = arith.constant 0 : i32
    %c0_i32_1 = arith.constant 0 : i32
    %c0_i32_2 = arith.constant 0 : i32
    return %c0_i32, %c0_i32_0, %c0_i32_1 : i32, i32, i32
  }
  func.func @transform_4(%arg0: i32) -> (i32, i32) {
    %c0_i32 = arith.constant 0 : i32
    %c0_i32_0 = arith.constant 0 : i32
    %c0_i32_1 = arith.constant 0 : i32
    return %c0_i32, %c0_i32_0 : i32, i32
  }
  func.func @transform_5(%arg0: i32) -> (i32, i32, i32) {
    %c0_i32 = arith.constant 0 : i32
    %c0_i32_0 = arith.constant 0 : i32
    %c0_i32_1 = arith.constant 0 : i32
    %c0_i32_2 = arith.constant 0 : i32
    return %c0_i32, %c0_i32_0, %c0_i32_1 : i32, i32, i32
  }
  func.func @transform_6(%arg0: i32) -> (i32, i32) {
    %c0_i32 = arith.constant 0 : i32
    %c0_i32_0 = arith.constant 0 : i32
    %c0_i32_1 = arith.constant 0 : i32
    return %c0_i32, %c0_i32_0 : i32, i32
  }
  func.func @transform_7(%arg0: i32) -> (i32, i32) {
    %c0_i32 = arith.constant 0 : i32
    %c0_i32_0 = arith.constant 0 : i32
    %c0_i32_1 = arith.constant 0 : i32
    return %c0_i32, %c0_i32_0 : i32, i32
  }
  func.func @transform_8(%arg0: i32) -> (i32, i32) {
    %c0_i32 = arith.constant 0 : i32
    %c0_i32_0 = arith.constant 0 : i32
    %c0_i32_1 = arith.constant 0 : i32
    return %c0_i32, %c0_i32_0 : i32, i32
  }
  func.func @transform_9(%arg0: i32) -> (i32, i32) {
    %c0_i32 = arith.constant 0 : i32
    %c0_i32_0 = arith.constant 0 : i32
    %c0_i32_1 = arith.constant 0 : i32
    return %c0_i32, %c0_i32_0 : i32, i32
  }
  func.func @transform_10(%arg0: i32) -> (i32, i32) {
    %c0_i32 = arith.constant 0 : i32
    %c0_i32_0 = arith.constant 0 : i32
    %c0_i32_1 = arith.constant 0 : i32
    return %c0_i32, %c0_i32_0 : i32, i32
  }
  func.func @transform_11(%arg0: i32) -> (i32, i32, i32) {
    %c0_i32 = arith.constant 0 : i32
    %c0_i32_0 = arith.constant 0 : i32
    %c0_i32_1 = arith.constant 0 : i32
    return %arg0, %c0_i32, %c0_i32_0 : i32, i32, i32
  }
}

</mosaic_0001>

<bundles_post_ra>
// kernel: tpu_custom_call.1
= control target key start
LH: loop header
LB: loop body
LE: loop exit
PB: predicated region body
PF: predicated region fallthrough
CT: control target
= control target key end

     0   :  { %16 = vsyncpa [#allocation3], 0  ;;  %s2709_s0 = inlined_call_operand.vmem [shape: f32[2,16,128], index: 0, kind: input, shape index: {}]   ;;  %s2710_s1 = inlined_call_operand.vmem [shape: f32[3,128,128], index: 1, kind: input, shape index: {}]   ;;  %s2711_s2 = inlined_call_operand.vmem [shape: f32[1,128], index: 2, kind: input, shape index: {}]   ;;  %s2712_s3 = inlined_call_operand.vmem [shape: f32[3,128,128], index: 3, kind: input, shape index: {}]   ;;  %s2713_s4 = inlined_call_operand.vmem [shape: f32[1,128], index: 4, kind: input, shape index: {}]   ;;  %s2714_s5 = inlined_call_operand.vmem [shape: f32[12,128,32], index: 5, kind: input, shape index: {}]   ;;  %s2715_s6 = inlined_call_operand.vmem [shape: f32[1,32], index: 6, kind: input, shape index: {}]   ;;  %s2716_s7 = inlined_call_operand.vmem [shape: f32[32,16], index: 7, kind: input, shape index: {}]   ;;  %s2717_s8 = inlined_call_operand.vmem [shape: f32[1,16], index: 8, kind: input, shape index: {}]   ;;  %s2718_s9 = inlined_call_operand.vmem [shape: f32[16,128], index: 9, kind: input, shape index: {}]   ;;  %s2719_s10 = inlined_call_operand.vmem [shape: f32[1,128], index: 10, kind: input, shape index: {}]   ;;  %s2720_s11 = inlined_call_operand.hbm [shape: f32[2,1,128], index: 11, kind: output, shape index: {}]  }
   0x1   :  { %18 = vsyncpa [#allocation3 + $0x1], 0  ;;  %s1719_s17 = smov 0   ;;  %s1721_s18 = smov 0  }
   0x2   :  { %s1723_s19 = smov 0   ;;  %s1725_s20 = smov 0  }
   0x3 LB: > { %2722 = sst [smem:[#allocation5_spill]] %s1653_s19  ;;  %s1740_s21 = sadd.s32 4294967295, %s1657_s20   ;;  %s1657_s20 = sphi %s1725_s20, %s2730_s20   ;;  %s1653_s19 = sphi %s1723_s19, %s2727_s19   ;;  %s1649_s18 = sphi %s1721_s18, %s2729_s18   ;;  %s1645_s17 = sphi %s1719_s17, %s2728_s17  }
   0x4   : > { %s1299_s22 = sadd.s32 4294967294, %s1657_s20   ;;  %s1744_s23 = sadd.s32 1, %s1657_s20  }
   0x5   : > { %s267_s24 = sadd.s32 1, %s1653_s19  ;;  %s264_s25 = ssub.s32 %s1657_s20, %s1744_s23 }
   0x6   : > { %p277_p0 = scmp.ne.s32.totalorder %s1653_s19, %s1649_s18  ;;  %p265_p1 = scmp.eq.s32.totalorder %s264_s25, 0 }
   0x7   : > { %p278_p2 = scmp.eq.s32.totalorder %s1740_s21, 1  ;;  %p283_p3 = scmp.ne.s32.totalorder %s1649_s18, %s1645_s17 }
   0x8   : > { %p284_p4 = scmp.eq.s32.totalorder %s1299_s22, 1  ;;  %p1302_p7 = scmp.ge.s32.totalorder %s1657_s20, 1 }
   0x9   : > { %s1755_s26 = scalar_select %p265_p1, %s1653_s19, %s267_s24  }
   0xa   : > { %p1757_p5 = por %p278_p2, %p277_p0  ;;  %p1761_p6 = por %p284_p4, %p283_p3 }
   0xb   : > { %2723 = sst [smem:[#allocation6_spill]] %s1755_s26  ;;  %p340_p8 = scmp.lt.s32.totalorder %s1657_s20, 3 }
   0xd   : > { %p341_p9 = pnand %p1302_p7, %p340_p8 }
   0xe   : > { %p379_p10 = scmp.lt.s32.totalorder (!%p341_p9), %s1740_s21, 1  ;;  %s377_s13 = sand.u32 (!%p341_p9), 1, %s1649_s18  }
   0xf   : > { %344 = sbr.rel (%p341_p9) target bundleno = 1059 (0x423), region = 64  ;;  %s378_s22 = scalar_lea.vmem (!%p341_p9), [#allocation2], %s377_s13 }
  0x10   : > { %s1232_s26 = scalar_lea.sflag (!%p341_p9), [#allocation3], %s377_s13  ;;  %s1615_s19 = scalar_lea.hbm (!%p341_p9), %s2720_s11, 2 }
  0x14   : > { %v1336_v0 = vld [vmem:[%s2710_s1 + $0x178] sm:$0xff]  ;;  %v1335_v1 = vld [vmem:[%s2710_s1 + $0x170] sm:$0xff]  ;;  %v1334_v5 = vld [vmem:[%s2710_s1 + $0x168] sm:$0xff]  ;;  %s380_s16 = scalar_select %p379_p10, %s1740_s21, 1  ;;  %vm490_vm0 = vcmask 1045504   ;;  %vm421_vm1 = vcmask 1046528  }
  0x15   : > { %v1320_v2 = vld [vmem:[%s2710_s1 + $0xf8] sm:$0xff]  ;;  %496 = vmatpush.msra.mxu2 %v1336_v0  ;;  %v1319_v4 = vld [vmem:[%s2710_s1 + $0xf0] sm:$0xff]  ;;  %v1318_v7 = vld [vmem:[%s2710_s1 + $0xe8] sm:$0xff]  ;;  %vm1153_vm2 = vcmask 261120   ;;  %vm1181_vm3 = vcmask 130048   ;;  %vm1205_vm4 = vcmask 1040384  }
  0x16   : > { %427 = vmatpush.msra.mxu0 %v1320_v2  ;;  %v401_v3 = vld [vmem:[%s2710_s1 + $0x78] sm:$0xff]  ;;  %v400_v6 = vld [vmem:[%s2710_s1 + $0x70] sm:$0xff]  ;;  %v399_v8 = vld [vmem:[%s2710_s1 + $0x68] sm:$0xff]  ;;  %s1549_s25 = sshll.u32 %s380_s16, 4  ;;  %s1240_s16 = scalar_lea.hbm %s2720_s11, %s1740_s21 }
  0x17   : > { %450 = vmatpush.msra.mxu1 %v401_v3  ;;  %497 = vmatpush.msra.mxu2 %v1335_v1  ;;  %v1333_v9 = vld [vmem:[%s2710_s1 + $0x160] sm:$0xff]  ;;  %v1332_v12 = vld [vmem:[%s2710_s1 + $0x158] sm:$0xff]  ;;  %v1331_v15 = vld [vmem:[%s2710_s1 + $0x150] sm:$0xff]  ;;  %s383_s29 = scalar_lea.vmem %s2709_s0, %s1549_s25  ;;  %s1242_s25 = sshll.u32 %s378_s22, 4  ;;  %s1243_s25 = int_to_ptr.vmem [resolvable:$true] %s1242_s25 }
  0x18   : > { %428 = vmatpush.msra.mxu0 %v1319_v4  ;;  %v1317_v10 = vld [vmem:[%s2710_s1 + $0xe0] sm:$0xff]  ;;  %v1316_v13 = vld [vmem:[%s2710_s1 + $0xd8] sm:$0xff]  ;;  %v1315_v16 = vld [vmem:[%s2710_s1 + $0xd0] sm:$0xff]  ;;  %s1244_s24 = sshll.u32 %s1240_s16, 4  ;;  %s1245_s24 = int_to_ptr.hbm [resolvable:$true] %s1244_s24 }
  0x19   : > { %451 = vmatpush.msra.mxu1 %v400_v6  ;;  %498 = vmatpush.msra.mxu2 %v1334_v5  ;;  %v398_v11 = vld [vmem:[%s2710_s1 + $0x60] sm:$0xff]  ;;  %v397_v14 = vld [vmem:[%s2710_s1 + $0x58] sm:$0xff]  ;;  %v396_v17 = vld [vmem:[%s2710_s1 + $0x50] sm:$0xff] }
  0x1a   : > { %429 = vmatpush.msra.mxu0 %v1318_v7  ;;  %v1330_v18 = vld [vmem:[%s2710_s1 + $0x148] sm:$0xff]  ;;  %v1329_v21 = vld [vmem:[%s2710_s1 + $0x140] sm:$0xff]  ;;  %v1328_v24 = vld [vmem:[%s2710_s1 + $0x138] sm:$0xff] }
  0x1b   : > { %452 = vmatpush.msra.mxu1 %v399_v8  ;;  %499 = vmatpush.msra.mxu2 %v1333_v9  ;;  %v1314_v19 = vld [vmem:[%s2710_s1 + $0xc8] sm:$0xff]  ;;  %v1313_v22 = vld [vmem:[%s2710_s1 + $0xc0] sm:$0xff]  ;;  %v1312_v25 = vld [vmem:[%s2710_s1 + $0xb8] sm:$0xff] }
  0x1c   : > { %430 = vmatpush.msra.mxu0 %v1317_v10  ;;  %v395_v20 = vld [vmem:[%s2710_s1 + $0x48] sm:$0xff]  ;;  %v394_v23 = vld [vmem:[%s2710_s1 + $0x40] sm:$0xff]  ;;  %v393_v26 = vld [vmem:[%s2710_s1 + $0x38] sm:$0xff] }
  0x1d   : > { %453 = vmatpush.msra.mxu1 %v398_v11  ;;  %500 = vmatpush.msra.mxu2 %v1332_v12  ;;  %v1327_v27 = vld [vmem:[%s2710_s1 + $0x130] sm:$0xff]  ;;  %v1326_v30 = vld [vmem:[%s2710_s1 + $0x128] sm:$0xff]  ;;  %v1352_v32 = vld [vmem:[%s2712_s3 + $0xf8] sm:$0xff] }
  0x1e   : > { %431 = vmatpush.msra.mxu0 %v1316_v13  ;;  %v1311_v28 = vld [vmem:[%s2710_s1 + $0xb0] sm:$0xff]  ;;  %v1310_v31 = vld [vmem:[%s2710_s1 + $0xa8] sm:$0xff]  ;;  %v1325_v35 = vld [vmem:[%s2710_s1 + $0x120] sm:$0xff]  ;;  %569 = vmatpush.msra.mxu3 %v1352_v32 }
  0x1f   : > { %454 = vmatpush.msra.mxu1 %v397_v14  ;;  %501 = vmatpush.msra.mxu2 %v1331_v15  ;;  %v392_v29 = vld [vmem:[%s2710_s1 + $0x30] sm:$0xff]  ;;  %v391_v33 = vld [vmem:[%s2710_s1 + $0x28] sm:$0xff]  ;;  %v1309_v36 = vld [vmem:[%s2710_s1 + $0xa0] sm:$0xff] }
  0x20   : > { %432 = vmatpush.msra.mxu0 %v1315_v16  ;;  %v1351_v34 = vld [vmem:[%s2712_s3 + $0xf0] sm:$0xff]  ;;  %v1324_v37 = vld [vmem:[%s2710_s1 + $0x118] sm:$0xff]  ;;  %v390_v38 = vld [vmem:[%s2710_s1 + $0x20] sm:$0xff] }
  0x21   : > { %455 = vmatpush.msra.mxu1 %v396_v17  ;;  %502 = vmatpush.msra.mxu2 %v1330_v18  ;;  %v1350_v39 = vld [vmem:[%s2712_s3 + $0xe8] sm:$0xff]  ;;  %v1308_v40 = vld [vmem:[%s2710_s1 + $0x98] sm:$0xff]  ;;  %v384_v41 = vld [vmem:[%s383_s29] sm:$0xff] }
  0x22   : > { %433 = vmatpush.msra.mxu0 %v1314_v19  ;;  %v385_v42 = vld [vmem:[%s383_s29 + $0x8] sm:$0xff]  ;;  %570 = vmatpush.msra.mxu3 %v1351_v34  ;;  %v1323_v43 = vld [vmem:[%s2710_s1 + $0x110] sm:$0xff]  ;;  %v389_v44 = vld [vmem:[%s2710_s1 + $0x18] sm:$0xff]  ;;  %v491_v48 = vrot.slane %v384_v41, 2  ;;  %v422_v53 = vrot.slane %v384_v41, 1  ;;  %s1609_s29 = sshra.s32 %s1245_s24, 4  ;;  %s1610_s29 = int_to_ptr.hbm [resolvable:$true] %s1609_s29 }
  0x23   : > { %456 = vmatpush.msra.mxu1 %v395_v20  ;;  %503 = vmatpush.msra.mxu2 %v1329_v21  ;;  %v1349_v45 = vld [vmem:[%s2712_s3 + $0xe0] sm:$0xff]  ;;  %v1307_v46 = vld [vmem:[%s2710_s1 + $0x90] sm:$0xff]  ;;  %v492_v49 = vrot.slane %v385_v42, 2  ;;  %v1348_v50 = vld [vmem:[%s2712_s3 + $0xd8] sm:$0xff]  ;;  %v423_v54 = vrot.slane %v385_v42, 1  ;;  %s1611_s30 = scalar_lea.hbm %s1610_s29, 1  ;;  %p1616_p0 = scmp.lt.s32.totalorder %s1610_s29, %s2720_s11 }
  0x24   : > { %434 = vmatpush.msra.mxu0 %v1313_v22  ;;  %571 = vmatpush.msra.mxu3 %v1350_v39  ;;  %v388_v47 = vld [vmem:[%s2710_s1 + $0x10] sm:$0xff]  ;;  %v1322_v51 = vld [vmem:[%s2710_s1 + $0x108] sm:$0xff]  ;;  %v1321_v57 = vld [vmem:[%s2710_s1 + $0x100] sm:$0xff]  ;;  %p1612_p11 = scmp.ne.s32.totalorder %s1610_s29, %s1611_s30  ;;  %p1617_p1 = scmp.lt.s32.totalorder %s1615_s19, %s1611_s30 }
  0x25   : > { %457 = vmatpush.msra.mxu1 %v394_v23  ;;  %504 = vmatpush.msra.mxu2 %v1328_v24  ;;  %v1306_v52 = vld [vmem:[%s2710_s1 + $0x88] sm:$0xff]  ;;  %v1347_v56 = vld [vmem:[%s2712_s3 + $0xd0] sm:$0xff]  ;;  %v1305_v58 = vld [vmem:[%s2710_s1 + $0x80] sm:$0xff]  ;;  %v493_v59 = vsel %vm490_vm0, %v491_v48, %v492_v49  ;;  %v424_v61 = vsel %vm421_vm1, %v422_v53, %v423_v54 }
  0x26   : > { %435 = vmatpush.msra.mxu0 %v1312_v25  ;;  %572 = vmatpush.msra.mxu3 %v1349_v45  ;;  %v387_v55 = vld [vmem:[%s2710_s1 + $0x8] sm:$0xff]  ;;  %v386_v60 = vld [vmem:[%s2710_s1] sm:$0xff]  ;;  %v544_v62 = vld [vmem:[%s2712_s3 + $0x78] sm:$0xff]  ;;  %p1613_p12 = pnand %p1612_p11, %p1757_p5  ;;  %p1618_p2 = por %p1617_p1, %p1616_p0 }
  0x27   : > { %458 = vmatpush.msra.mxu1 %v393_v26  ;;  %505 = vmatpush.msra.mxu2 %v1327_v27  ;;  %v1368_v63 = vld [vmem:[%s2712_s3 + $0x178] sm:$0xff]  ;;  %v543_v0 = vld [vmem:[%s2712_s3 + $0x70] sm:$0xff]  ;;  %v542_v2 = vld [vmem:[%s2712_s3 + $0x68] sm:$0xff] }
  0x28   : > { %436 = vmatpush.msra.mxu0 %v1311_v28  ;;  %573 = vmatpush.msra.mxu3 %v1348_v50  ;;  %v1367_v1 = vld [vmem:[%s2712_s3 + $0x170] sm:$0xff]  ;;  %v1366_v3 = vld [vmem:[%s2712_s3 + $0x168] sm:$0xff]  ;;  %v541_v4 = vld [vmem:[%s2712_s3 + $0x60] sm:$0xff]  ;;  %p1614_p13 = pneg %p1613_p12 }
  0x29   : > { %459 = vmatpush.msra.mxu1 %v392_v29  ;;  %506 = vmatpush.msra.mxu2 %v1326_v30  ;;  %v540_v5 = vld [vmem:[%s2712_s3 + $0x58] sm:$0xff]  ;;  %v1365_v6 = vld [vmem:[%s2712_s3 + $0x160] sm:$0xff]  ;;  %v539_v7 = vld [vmem:[%s2712_s3 + $0x50] sm:$0xff] }
  0x2a   : > { %437 = vmatpush.msra.mxu0 %v1310_v31  ;;  %574 = vmatpush.msra.mxu3 %v1347_v56  ;;  %v1364_v8 = vld [vmem:[%s2712_s3 + $0x158] sm:$0xff]  ;;  %v538_v9 = vld [vmem:[%s2712_s3 + $0x48] sm:$0xff]  ;;  %v1363_v10 = vld [vmem:[%s2712_s3 + $0x150] sm:$0xff]  ;;  %p1619_p3 = pnand %p1618_p2, %p1614_p13 }
  0x2b   : > { %460 = vmatpush.msra.mxu1 %v391_v33  ;;  %507 = vmatpush.msra.mxu2 %v1325_v35  ;;  %v537_v11 = vld [vmem:[%s2712_s3 + $0x40] sm:$0xff]  ;;  %v536_v12 = vld [vmem:[%s2712_s3 + $0x38] sm:$0xff]  ;;  %v535_v13 = vld [vmem:[%s2712_s3 + $0x30] sm:$0xff] }
  0x2c   : > { %438 = vmatpush.msra.mxu0 %v1309_v36  ;;  %v534_v14 = vld [vmem:[%s2712_s3 + $0x28] sm:$0xff]  ;;  %v533_v15 = vld [vmem:[%s2712_s3 + $0x20] sm:$0xff]  ;;  %v532_v18 = vld [vmem:[%s2712_s3 + $0x18] sm:$0xff] }
  0x2d   : > { %461 = vmatpush.msra.mxu1 %v390_v38  ;;  %508 = vmatpush.msra.mxu2 %v1324_v37  ;;  %v1346_v16 = vld [vmem:[%s2712_s3 + $0xc8] sm:$0xff]  ;;  %v1345_v19 = vld [vmem:[%s2712_s3 + $0xc0] sm:$0xff]  ;;  %v531_v21 = vld [vmem:[%s2712_s3 + $0x10] sm:$0xff] }
  0x2e   : > { %439 = vmatpush.msra.mxu0 %v1308_v40  ;;  %v1362_v17 = vld [vmem:[%s2712_s3 + $0x148] sm:$0xff]  ;;  %575 = vmatpush.msra.mxu3 %v1346_v16  ;;  %v1361_v20 = vld [vmem:[%s2712_s3 + $0x140] sm:$0xff]  ;;  %v1344_v22 = vld [vmem:[%s2712_s3 + $0xb8] sm:$0xff] }
  0x2f   : > { %462 = vmatpush.msra.mxu1 %v389_v44  ;;  %509 = vmatpush.msra.mxu2 %v1323_v43  ;;  %v1360_v23 = vld [vmem:[%s2712_s3 + $0x138] sm:$0xff]  ;;  %v530_v24 = vld [vmem:[%s2712_s3 + $0x8] sm:$0xff]  ;;  %v1343_v25 = vld [vmem:[%s2712_s3 + $0xb0] sm:$0xff] }
  0x30   : > { %440 = vmatpush.msra.mxu0 %v1307_v46  ;;  %576 = vmatpush.msra.mxu3 %v1345_v19  ;;  %v1359_v26 = vld [vmem:[%s2712_s3 + $0x130] sm:$0xff]  ;;  %v529_v27 = vld [vmem:[%s2712_s3] sm:$0xff]  ;;  %v1342_v28 = vld [vmem:[%s2712_s3 + $0xa8] sm:$0xff] }
  0x31   : > { %463 = vmatpush.msra.mxu1 %v388_v47  ;;  %510 = vmatpush.msra.mxu2 %v1322_v51  ;;  %v1358_v29 = vld [vmem:[%s2712_s3 + $0x128] sm:$0xff]  ;;  %v1341_v30 = vld [vmem:[%s2712_s3 + $0xa0] sm:$0xff]  ;;  %v1340_v32 = vld [vmem:[%s2712_s3 + $0x98] sm:$0xff] }
  0x32   : > { %441 = vmatpush.msra.mxu0 %v1306_v52  ;;  %577 = vmatpush.msra.mxu3 %v1344_v22  ;;  %v1357_v31 = vld [vmem:[%s2712_s3 + $0x120] sm:$0xff]  ;;  %v1356_v33 = vld [vmem:[%s2712_s3 + $0x118] sm:$0xff]  ;;  %v1339_v34 = vld [vmem:[%s2712_s3 + $0x90] sm:$0xff] }
  0x33   : > { %464 = vmatpush.msra.mxu1 %v387_v55  ;;  %511 = vmatpush.msra.mxu2 %v1321_v57  ;;  %v1355_v35 = vld [vmem:[%s2712_s3 + $0x110] sm:$0xff]  ;;  %v1338_v36 = vld [vmem:[%s2712_s3 + $0x88] sm:$0xff]  ;;  %v1337_v38 = vld [vmem:[%s2712_s3 + $0x80] sm:$0xff] }
  0x34   : > { %442 = vmatpush.msra.mxu0 %v1305_v58  ;;  %512 = vmatmul.f32.vlgmr.msra.gmra.mxu2 %v493_v59  ;;  %v1354_v37 = vld [vmem:[%s2712_s3 + $0x108] sm:$0xff]  ;;  %v1353_v39 = vld [vmem:[%s2712_s3 + $0x100] sm:$0xff]  ;;  %v685_v40 = vld [vmem:[%s2714_s5 + $0x78] sm:$0xff] }
  0x35   : > { %465 = vmatpush.msra.mxu1 %v386_v60  ;;  %443 = vmatmul.f32.vlgmr.msra.gmra.mxu0 %v424_v61  ;;  %v1400_v45 = vld [vmem:[%s2714_s5 + $0x178] sm:$0xff]  ;;  %v1383_v47 = vld [vmem:[%s2714_s5 + $0xf0] sm:$0xff]  ;;  %v683_v48 = vld [vmem:[%s2714_s5 + $0x68] sm:$0xff] }
  0x36   : > { %466 = vmatmul.f32.vlgmr.msra.gmra.mxu1 %v384_v41  ;;  %592 = vmatpush.msrb.mxu0 %v544_v62  ;;  %v1384_v41 = vld [vmem:[%s2714_s5 + $0xf8] sm:$0xff]  ;;  %v1415_v50 = vld [vmem:[%s2714_s5 + $0x1f0] sm:$0xff]  ;;  %v1382_v52 = vld [vmem:[%s2714_s5 + $0xe8] sm:$0xff] }
  0x37   : > { %637 = vmatpush.msrb.mxu1 %v1368_v63  ;;  %578 = vmatpush.msra.mxu3 %v1343_v25  ;;  %v1416_v46 = vld [vmem:[%s2714_s5 + $0x1f8] sm:$0xff]  ;;  %v1398_v53 = vld [vmem:[%s2714_s5 + $0x168] sm:$0xff]  ;;  %v1381_v56 = vld [vmem:[%s2714_s5 + $0xe0] sm:$0xff] }
  0x38   : > { %593 = vmatpush.msrb.mxu0 %v543_v0  ;;  %706 = vmatpush.msrb.mxu2 %v1384_v41  ;;  %v1414_v55 = vld [vmem:[%s2714_s5 + $0x1e8] sm:$0xff]  ;;  %v1589_v57 = vld [vmem:[%s2711_s2] ss:$0 sm:$0xff]  ;;  %v681_v61 = vld [vmem:[%s2714_s5 + $0x58] sm:$0xff] }
  0x39   : > { %638 = vmatpush.msrb.mxu1 %v1367_v1  ;;  %579 = vmatpush.msra.mxu3 %v1342_v28  ;;  %v1397_v58 = vld [vmem:[%s2714_s5 + $0x160] sm:$0xff]  ;;  %v1380_v62 = vld [vmem:[%s2714_s5 + $0xd8] sm:$0xff]  ;;  %v1391_v28 = vld [vmem:[%s2714_s5 + $0x130] sm:$0xff] }
  0x3a   : > { %594 = vmatpush.msrb.mxu0 %v542_v2  ;;  %707 = vmatpush.msrb.mxu2 %v1383_v47  ;;  %v1413_v59 = vld [vmem:[%s2714_s5 + $0x1e0] sm:$0xff]  ;;  %v1396_v0 = vld [vmem:[%s2714_s5 + $0x158] sm:$0xff]  ;;  %v680_v2 = vld [vmem:[%s2714_s5 + $0x50] sm:$0xff] }
  0x3b   : > { %639 = vmatpush.msrb.mxu1 %v1366_v3  ;;  %580 = vmatpush.msra.mxu3 %v1341_v30  ;;  %v1412_v1 = vld [vmem:[%s2714_s5 + $0x1d8] sm:$0xff]  ;;  %v1379_v3 = vld [vmem:[%s2714_s5 + $0xd0] sm:$0xff]  ;;  %v1377_v16 = vld [vmem:[%s2714_s5 + $0xc0] sm:$0xff] }
  0x3c   : > { %515 = vmatmul.f32.gmra.mxu2 %v492_v49  ;;  %595 = vmatpush.msrb.mxu0 %v541_v4  ;;  %v1399_v49 = vld [vmem:[%s2714_s5 + $0x170] sm:$0xff]  ;;  %v677_v19 = vld [vmem:[%s2714_s5 + $0x38] sm:$0xff] }
  0x3d   : > { %446 = vmatmul.f32.gmra.mxu0 %v423_v54  ;;  %640 = vmatpush.msrb.mxu1 %v1365_v6  ;;  %v682_v54 = vld [vmem:[%s2714_s5 + $0x60] sm:$0xff]  ;;  %v1376_v22 = vld [vmem:[%s2714_s5 + $0xb8] sm:$0xff]  ;;  %v672_v47 = vld [vmem:[%s2714_s5 + $0x10] sm:$0xff] }
  0x3e   : > { %469 = vmatmul.f32.gmra.mxu1 %v385_v42  ;;  %596 = vmatpush.msrb.mxu0 %v540_v5  ;;  %v684_v42 = vld [vmem:[%s2714_s5 + $0x70] sm:$0xff]  ;;  %v1408_v25 = vld [vmem:[%s2714_s5 + $0x1b8] sm:$0xff] }
  0x3f   : > { %641 = vmatpush.msrb.mxu1 %v1364_v8  ;;  %581 = vmatpush.msra.mxu3 %v1340_v32  ;;  %v1411_v8 = vld [vmem:[%s2714_s5 + $0x1d0] sm:$0xff]  ;;  %v1374_v32 = vld [vmem:[%s2714_s5 + $0xa8] sm:$0xff] }
  0x40   : > { %597 = vmatpush.msrb.mxu0 %v539_v7  ;;  %708 = vmatpush.msrb.mxu2 %v1382_v52  ;;  %v1395_v7 = vld [vmem:[%s2714_s5 + $0x150] sm:$0xff] }
  0x41   : > { %642 = vmatpush.msrb.mxu1 %v1363_v10  ;;  %582 = vmatpush.msra.mxu3 %v1339_v34  ;;  %v1390_v34 = vld [vmem:[%s2714_s5 + $0x128] sm:$0xff]  ;;  %v1387_v52 = vld [vmem:[%s2714_s5 + $0x110] sm:$0xff] }
  0x42   : > { %598 = vmatpush.msrb.mxu0 %v538_v9  ;;  %709 = vmatpush.msrb.mxu2 %v1381_v56  ;;  %v679_v9 = vld [vmem:[%s2714_s5 + $0x48] sm:$0xff] }
  0x43   : > { %643 = vmatpush.msrb.mxu1 %v1362_v17  ;;  %583 = vmatpush.msra.mxu3 %v1338_v36  ;;  %v1393_v17 = vld [vmem:[%s2714_s5 + $0x140] sm:$0xff]  ;;  %v1386_v56 = vld [vmem:[%s2714_s5 + $0x108] sm:$0xff] }
  0x44   : > { %599 = vmatpush.msrb.mxu0 %v537_v11  ;;  %710 = vmatpush.msrb.mxu2 %v1380_v62  ;;  %v1432_v62 = vld [vmem:[%s2714_s5 + $0x278] sm:$0xff] }
  0x45   : > { %644 = vmatpush.msrb.mxu1 %v1361_v20  ;;  %584 = vmatpush.msra.mxu3 %v1337_v38  ;;  %v1409_v20 = vld [vmem:[%s2714_s5 + $0x1c0] sm:$0xff] }
  0x46   : > { %600 = vmatpush.msrb.mxu0 %v536_v12  ;;  %711 = vmatpush.msrb.mxu2 %v1379_v3  ;;  %v1378_v12 = vld [vmem:[%s2714_s5 + $0xc8] sm:$0xff] }
  0x47   : > { %645 = vmatpush.msrb.mxu1 %v1360_v23  ;;  %726 = vmatpush.msrb.mxu3 %v685_v40  ;;  %v1392_v23 = vld [vmem:[%s2714_s5 + $0x138] sm:$0xff]  ;;  %v1373_v40 = vld [vmem:[%s2714_s5 + $0xa0] sm:$0xff]  ;;  %v1446_v3 = vld [vmem:[%s2714_s5 + $0x2e8] sm:$0xff] }
  0x48   : > { %601 = vmatpush.msrb.mxu0 %v535_v13  ;;  %v1394_v13 = vld [vmem:[%s2714_s5 + $0x148] sm:$0xff]  ;;  %712 = vmatpush.msrb.mxu2 %v1378_v12  ;;  %v1461_v12 = vld [vmem:[%s2714_s5 + $0x360] sm:$0xff] }
  0x49   : > { %646 = vmatpush.msrb.mxu1 %v1359_v26  ;;  %727 = vmatpush.msrb.mxu3 %v684_v42 }
  0x4a   : > { %602 = vmatpush.msrb.mxu0 %v534_v14  ;;  %v678_v14 = vld [vmem:[%s2714_s5 + $0x40] sm:$0xff]  ;;  %713 = vmatpush.msrb.mxu2 %v1377_v16  ;;  %v1460_v16 = vld [vmem:[%s2714_s5 + $0x358] sm:$0xff] }
  0x4b   : > { %647 = vmatpush.msrb.mxu1 %v1358_v29  ;;  %728 = vmatpush.msrb.mxu3 %v683_v48  ;;  %v675_v29 = vld [vmem:[%s2714_s5 + $0x28] sm:$0xff]  ;;  %v1388_v48 = vld [vmem:[%s2714_s5 + $0x118] sm:$0xff] }
  0x4c   : > { %603 = vmatpush.msrb.mxu0 %v533_v15  ;;  %v1410_v15 = vld [vmem:[%s2714_s5 + $0x1c8] sm:$0xff]  ;;  %714 = vmatpush.msrb.mxu2 %v1376_v22 }
  0x4d   : > { %648 = vmatpush.msrb.mxu1 %v1357_v31  ;;  %729 = vmatpush.msrb.mxu3 %v682_v54  ;;  %v1407_v31 = vld [vmem:[%s2714_s5 + $0x1b0] sm:$0xff]  ;;  %v1370_v54 = vld [vmem:[%s2714_s5 + $0x88] sm:$0xff] }
  0x4e   : > { %604 = vmatpush.msrb.mxu0 %v532_v18  ;;  %v1426_v22 = vld [vmem:[%s2714_s5 + $0x248] sm:$0xff] }
  0x4f   : > { %649 = vmatpush.msrb.mxu1 %v1356_v33  ;;  %730 = vmatpush.msrb.mxu3 %v681_v61  ;;  %v674_v33 = vld [vmem:[%s2714_s5 + $0x20] sm:$0xff] }
  0x50   : > { %605 = vmatpush.msrb.mxu0 %v531_v21  ;;  %v1401_v61 = vld [vmem:[%s2714_s5 + $0x180] sm:$0xff] }
  0x51   : > { %650 = vmatpush.msrb.mxu1 %v1355_v35  ;;  %731 = vmatpush.msrb.mxu3 %v680_v2  ;;  %v1431_v2 = vld [vmem:[%s2714_s5 + $0x270] sm:$0xff] }
  0x52   : > { %606 = vmatpush.msrb.mxu0 %v530_v24  ;;  %v676_v24 = vld [vmem:[%s2714_s5 + $0x30] sm:$0xff] }
  0x53   : > { %651 = vmatpush.msrb.mxu1 %v1354_v37  ;;  %732 = vmatpush.msrb.mxu3 %v679_v9  ;;  %v1478_v9 = vld [vmem:[%s2714_s5 + $0x3e8] sm:$0xff] }
  0x54   : > { %607 = vmatpush.msrb.mxu0 %v529_v27  ;;  %v1375_v27 = vld [vmem:[%s2714_s5 + $0xb0] sm:$0xff] }
  0x55   : > { %652 = vmatpush.msrb.mxu1 %v1353_v39  ;;  %733 = vmatpush.msrb.mxu3 %v678_v14  ;;  %v1406_v39 = vld [vmem:[%s2714_s5 + $0x1a8] sm:$0xff]  ;;  %v1428_v14 = vld [vmem:[%s2714_s5 + $0x258] sm:$0xff] }
  0x56   : > { %765 = vmatpush.msra.mxu0 %v1400_v45  ;;  %715 = vmatpush.msrb.mxu2 %v1375_v27  ;;  %v1405_v45 = vld [vmem:[%s2714_s5 + $0x1a0] sm:$0xff]  ;;  %v1440_v27 = vld [vmem:[%s2714_s5 + $0x2b8] sm:$0xff] }
  0x57   : > { %805 = vmatpush.msra.mxu1 %v1416_v46  ;;  %734 = vmatpush.msrb.mxu3 %v677_v19  ;;  %v1372_v46 = vld [vmem:[%s2714_s5 + $0x98] sm:$0xff]  ;;  %v1442_v19 = vld [vmem:[%s2714_s5 + $0x2c8] sm:$0xff] }
  0x58   : > { %766 = vmatpush.msra.mxu0 %v1399_v49  ;;  %716 = vmatpush.msrb.mxu2 %v1374_v32  ;;  %v1404_v49 = vld [vmem:[%s2714_s5 + $0x198] sm:$0xff] }
  0x59   : > { %806 = vmatpush.msra.mxu1 %v1415_v50  ;;  %735 = vmatpush.msrb.mxu3 %v676_v24  ;;  %v1371_v50 = vld [vmem:[%s2714_s5 + $0x90] sm:$0xff]  ;;  %v1458_v24 = vld [vmem:[%s2714_s5 + $0x348] sm:$0xff]  ;;  %v1456_v32 = vld [vmem:[%s2714_s5 + $0x338] sm:$0xff] }
  0x5a   : > { %767 = vmatpush.msra.mxu0 %v1398_v53  ;;  %717 = vmatpush.msrb.mxu2 %v1373_v40  ;;  %v1403_v53 = vld [vmem:[%s2714_s5 + $0x190] sm:$0xff]  ;;  %v1454_v40 = vld [vmem:[%s2714_s5 + $0x328] sm:$0xff] }
  0x5b   : > { %807 = vmatpush.msra.mxu1 %v1414_v55  ;;  %736 = vmatpush.msrb.mxu3 %v675_v29  ;;  %v670_v55 = vld [vmem:[%s2714_s5] sm:$0xff] }
  0x5c   : > { %768 = vmatpush.msra.mxu0 %v1397_v58  ;;  %718 = vmatpush.msrb.mxu2 %v1372_v46  ;;  %v1448_v58 = vld [vmem:[%s2714_s5 + $0x2f8] sm:$0xff]  ;;  %v1473_v29 = vld [vmem:[%s2714_s5 + $0x3c0] sm:$0xff] }
  0x5d   : > { %808 = vmatpush.msra.mxu1 %v1413_v59  ;;  %737 = vmatpush.msrb.mxu3 %v674_v33  ;;  %v1369_v59 = vld [vmem:[%s2714_s5 + $0x80] sm:$0xff]  ;;  %v1472_v33 = vld [vmem:[%s2714_s5 + $0x3b8] sm:$0xff] }
  0x5e   : > { %769 = vmatpush.msra.mxu0 %v1396_v0  ;;  %719 = vmatpush.msrb.mxu2 %v1371_v50  ;;  %v1464_v0 = vld [vmem:[%s2714_s5 + $0x378] sm:$0xff]  ;;  %v1419_v50 = vld [vmem:[%s2714_s5 + $0x210] sm:$0xff] }
  0x5f   : > { %809 = vmatpush.msra.mxu1 %v1412_v1  ;;  %v1480_v1 = vld [vmem:[%s2714_s5 + $0x3f8] sm:$0xff] }
  0x60   : > { %770 = vmatpush.msra.mxu0 %v1395_v7  ;;  %720 = vmatpush.msrb.mxu2 %v1370_v54  ;;  %v1445_v7 = vld [vmem:[%s2714_s5 + $0x2e0] sm:$0xff]  ;;  %v1420_v46 = vld [vmem:[%s2714_s5 + $0x218] sm:$0xff]  ;;  %v1418_v54 = vld [vmem:[%s2714_s5 + $0x208] sm:$0xff] }
  0x61   : > { %810 = vmatpush.msra.mxu1 %v1411_v8  ;;  %v1462_v8 = vld [vmem:[%s2714_s5 + $0x368] sm:$0xff] }
  0x62   : > { %771 = vmatpush.msra.mxu0 %v1394_v13  ;;  %721 = vmatpush.msrb.mxu2 %v1369_v59  ;;  %v1477_v13 = vld [vmem:[%s2714_s5 + $0x3e0] sm:$0xff] }
  0x63   : > { %811 = vmatpush.msra.mxu1 %v1410_v15  ;;  %v1443_v15 = vld [vmem:[%s2714_s5 + $0x2d0] sm:$0xff]  ;;  %v1449_v59 = vld [vmem:[%s2714_s5 + $0x300] sm:$0xff] }
  0x64   : > { %772 = vmatpush.msra.mxu0 %v1393_v17  ;;  %845 = vmatpush.msra.mxu2 %v1432_v62  ;;  %v1476_v17 = vld [vmem:[%s2714_s5 + $0x3d8] sm:$0xff] }
  0x65   : > { %812 = vmatpush.msra.mxu1 %v1409_v20  ;;  %v1459_v20 = vld [vmem:[%s2714_s5 + $0x350] sm:$0xff] }
  0x66   : > { %773 = vmatpush.msra.mxu0 %v1392_v23  ;;  %846 = vmatpush.msra.mxu2 %v1431_v2  ;;  %v1441_v23 = vld [vmem:[%s2714_s5 + $0x2c0] sm:$0xff] }
  0x67   : > { %813 = vmatpush.msra.mxu1 %v1408_v25  ;;  %v1474_v25 = vld [vmem:[%s2714_s5 + $0x3c8] sm:$0xff] }
  0x68   : > { %774 = vmatpush.msra.mxu0 %v1391_v28  ;;  %v1457_v28 = vld [vmem:[%s2714_s5 + $0x340] sm:$0xff] }
  0x69   : > { %814 = vmatpush.msra.mxu1 %v1407_v31  ;;  %v1439_v31 = vld [vmem:[%s2714_s5 + $0x2b0] sm:$0xff] }
  0x6a   : > { %775 = vmatpush.msra.mxu0 %v1390_v34  ;;  %v1423_v34 = vld [vmem:[%s2714_s5 + $0x230] sm:$0xff] }
  0x6b   : > { %815 = vmatpush.msra.mxu1 %v1406_v39  ;;  %v1437_v39 = vld [vmem:[%s2714_s5 + $0x2a0] sm:$0xff] }
  0x6d   : > { %816 = vmatpush.msra.mxu1 %v1405_v45  ;;  %v1469_v45 = vld [vmem:[%s2714_s5 + $0x3a0] sm:$0xff] }
  0x6f   : > { %817 = vmatpush.msra.mxu1 %v1404_v49  ;;  %v1468_v49 = vld [vmem:[%s2714_s5 + $0x398] sm:$0xff] }
  0x71   : > { %818 = vmatpush.msra.mxu1 %v1403_v53  ;;  %v1467_v53 = vld [vmem:[%s2714_s5 + $0x390] sm:$0xff] }
  0xb2   : > { %v444_v43 = vpop.f32.mrf.mxu0 }
  0xb3   : > { %v467_v44 = vpop.f32.mrf.mxu1 }
  0xb4   : > { %v468_v51 = vadd.f32 %v467_v44, %v444_v43  ;;  %v673_v43 = vld [vmem:[%s2714_s5 + $0x18] sm:$0xff]  ;;  %v1389_v44 = vld [vmem:[%s2714_s5 + $0x120] sm:$0xff] }
  0xb5   : > { %738 = vmatpush.msrb.mxu3 %v673_v43  ;;  %776 = vmatpush.msra.mxu0 %v1389_v44  ;;  %v1436_v43 = vld [vmem:[%s2714_s5 + $0x298] sm:$0xff]  ;;  %v1453_v44 = vld [vmem:[%s2714_s5 + $0x320] sm:$0xff] }
  0xb7   : > { %v513_v60 = vpop.f32.mrf.mxu2  ;;  %739 = vmatpush.msrb.mxu3 %v672_v47  ;;  %777 = vmatpush.msra.mxu0 %v1388_v48  ;;  %v1435_v47 = vld [vmem:[%s2714_s5 + $0x290] sm:$0xff]  ;;  %v1452_v48 = vld [vmem:[%s2714_s5 + $0x318] sm:$0xff] }
  0xb8   : > { %v519_v63 = vadd.f32 %v513_v60, %v468_v51  ;;  %v671_v51 = vld [vmem:[%s2714_s5 + $0x8] sm:$0xff]  ;;  %v1385_v60 = vld [vmem:[%s2714_s5 + $0x100] sm:$0xff] }
  0xb9   : > { %740 = vmatpush.msrb.mxu3 %v671_v51  ;;  %778 = vmatpush.msra.mxu0 %v1387_v52  ;;  %v1434_v51 = vld [vmem:[%s2714_s5 + $0x288] sm:$0xff]  ;;  %v1451_v52 = vld [vmem:[%s2714_s5 + $0x310] sm:$0xff] }
  0xba   : > { %v525_v4 = vadd.f32 %v1589_v57, %v519_v63  ;;  %v447_v5 = vpop.f32.mrf.mxu0  ;;  %v1447_v63 = vld [vmem:[%s2714_s5 + $0x2f0] sm:$0xff] }
  0xbb   : > { %v470_v6 = vpop.f32.mrf.mxu1  ;;  %741 = vmatpush.msrb.mxu3 %v670_v55  ;;  %779 = vmatpush.msra.mxu0 %v1386_v56  ;;  %v1433_v55 = vld [vmem:[%s2714_s5 + $0x280] sm:$0xff]  ;;  %v1450_v56 = vld [vmem:[%s2714_s5 + $0x308] sm:$0xff] }
  0xbc   : > { %v527_v10 = vmax.f32 %v525_v4, 0.0  ;;  %v471_v11 = vadd.f32 %v470_v6, %v447_v5  ;;  %v1463_v4 = vld [vmem:[%s2714_s5 + $0x370] sm:$0xff]  ;;  %v1430_v6 = vld [vmem:[%s2714_s5 + $0x268] sm:$0xff] }
  0xbd   : > { %780 = vmatpush.msra.mxu0 %v1385_v60  ;;  %v1479_v5 = vld [vmem:[%s2714_s5 + $0x3f0] sm:$0xff]  ;;  %847 = vmatpush.msra.mxu2 %v1430_v6  ;;  %v1465_v60 = vld [vmem:[%s2714_s5 + $0x380] sm:$0xff] }
  0xbe   : > { %608 = vmatmul.f32.vlgmr.msrb.gmra.mxu0 %v527_v10  ;;  %v564_v35 = vrot.slane %v527_v10, 1  ;;  %v632_v37 = vrot.slane %v527_v10, 2  ;;  %v1429_v10 = vld [vmem:[%s2714_s5 + $0x260] sm:$0xff] }
  0xbf   : > { %v516_v18 = vpop.f32.mrf.mxu2  ;;  %925 = vmatpush.msrb.mxu0 %v1464_v0  ;;  %848 = vmatpush.msra.mxu2 %v1429_v10  ;;  %v2454_v0 = vld [vmem:[%s2713_s4] ss:$0 sm:$0xff]  ;;  %v1511_v10 = vld [vmem:[%s2714_s5 + $0x4f0] sm:$0xff] }
  0xc0   : > { %v520_v21 = vadd.f32 %v516_v18, %v471_v11  ;;  %v1444_v11 = vld [vmem:[%s2714_s5 + $0x2d8] sm:$0xff]  ;;  %v1427_v18 = vld [vmem:[%s2714_s5 + $0x250] sm:$0xff] }
  0xc1   : > { %926 = vmatpush.msrb.mxu0 %v1463_v4  ;;  %849 = vmatpush.msra.mxu2 %v1428_v14  ;;  %v1510_v14 = vld [vmem:[%s2714_s5 + $0x4e8] sm:$0xff] }
  0xc2   : > { %v526_v26 = vadd.f32 %v1589_v57, %v520_v21  ;;  %v1402_v57 = vld [vmem:[%s2714_s5 + $0x188] sm:$0xff]  ;;  %v1475_v21 = vld [vmem:[%s2714_s5 + $0x3d0] sm:$0xff] }
  0xc3   : > { %819 = vmatpush.msra.mxu1 %v1402_v57  ;;  %927 = vmatpush.msrb.mxu0 %v1462_v8  ;;  %v1466_v57 = vld [vmem:[%s2714_s5 + $0x388] sm:$0xff] }
  0xc4   : > { %v528_v30 = vmax.f32 %v526_v26, 0.0  ;;  %850 = vmatpush.msra.mxu2 %v1427_v18  ;;  %v1425_v26 = vld [vmem:[%s2714_s5 + $0x240] sm:$0xff] }
  0xc5   : > { %820 = vmatpush.msra.mxu1 %v1401_v61  ;;  %928 = vmatpush.msrb.mxu0 %v1461_v12  ;;  %v1544_v12 = vld [vmem:[%s2714_s5 + $0x5f8] sm:$0xff]  ;;  %v1509_v18 = vld [vmem:[%s2714_s5 + $0x4e0] sm:$0xff] }
  0xc6   : > { %611 = vmatmul.f32.gmra.mxu0 %v528_v30  ;;  %v565_v36 = vrot.slane %v528_v30, 1  ;;  %v633_v38 = vrot.slane %v528_v30, 2  ;;  %851 = vmatpush.msra.mxu2 %v1426_v22  ;;  %v1424_v30 = vld [vmem:[%s2714_s5 + $0x238] sm:$0xff]  ;;  %v1493_v22 = vld [vmem:[%s2714_s5 + $0x460] sm:$0xff] }
  0xc7   : > { %929 = vmatpush.msrb.mxu0 %v1460_v16  ;;  %v1543_v16 = vld [vmem:[%s2714_s5 + $0x5f0] sm:$0xff] }
  0xc8   : > { %v566_v41 = vsel %vm421_vm1, %v564_v35, %v565_v36  ;;  %v634_v42 = vsel %vm490_vm0, %v632_v37, %v633_v38  ;;  %852 = vmatpush.msra.mxu2 %v1425_v26  ;;  %v1438_v35 = vld [vmem:[%s2714_s5 + $0x2a8] sm:$0xff]  ;;  %v1471_v37 = vld [vmem:[%s2714_s5 + $0x3b0] sm:$0xff] }
  0xc9   : > { %585 = vmatmul.f32.vlgmr.msra.gmra.mxu3 %v566_v41  ;;  %653 = vmatmul.f32.vlgmr.msrb.gmra.mxu1 %v634_v42  ;;  %v1470_v41 = vld [vmem:[%s2714_s5 + $0x3a8] sm:$0xff]  ;;  %v1421_v42 = vld [vmem:[%s2714_s5 + $0x220] sm:$0xff] }
  0xca   : > { %885 = vmatpush.msra.mxu3 %v1448_v58  ;;  %965 = vmatpush.msrb.mxu1 %v1480_v1  ;;  %v1417_v58 = vld [vmem:[%s2714_s5 + $0x200] sm:$0xff] }
  0xcb   : > { %930 = vmatpush.msrb.mxu0 %v1459_v20  ;;  %853 = vmatpush.msra.mxu2 %v1424_v30  ;;  %v1542_v20 = vld [vmem:[%s2714_s5 + $0x5e8] sm:$0xff]  ;;  %v1507_v30 = vld [vmem:[%s2714_s5 + $0x4d0] sm:$0xff] }
  0xcc   : > { %886 = vmatpush.msra.mxu3 %v1447_v63  ;;  %966 = vmatpush.msrb.mxu1 %v1479_v5  ;;  %v1512_v5 = vld [vmem:[%s2714_s5 + $0x4f8] sm:$0xff] }
  0xcd   : > { %931 = vmatpush.msrb.mxu0 %v1458_v24  ;;  %854 = vmatpush.msra.mxu2 %v1423_v34  ;;  %v1525_v24 = vld [vmem:[%s2714_s5 + $0x560] sm:$0xff]  ;;  %v1506_v34 = vld [vmem:[%s2714_s5 + $0x4c8] sm:$0xff] }
  0xce   : > { %887 = vmatpush.msra.mxu3 %v1446_v3  ;;  %967 = vmatpush.msrb.mxu1 %v1478_v9  ;;  %v1496_v9 = vld [vmem:[%s2714_s5 + $0x478] sm:$0xff] }
  0xcf   : > { %932 = vmatpush.msrb.mxu0 %v1457_v28  ;;  %v1492_v28 = vld [vmem:[%s2714_s5 + $0x458] sm:$0xff] }
  0xd0   : > { %888 = vmatpush.msra.mxu3 %v1445_v7  ;;  %968 = vmatpush.msrb.mxu1 %v1477_v13  ;;  %v1495_v13 = vld [vmem:[%s2714_s5 + $0x470] sm:$0xff] }
  0xd1   : > { %588 = vmatmul.f32.gmra.mxu3 %v565_v36  ;;  %656 = vmatmul.f32.gmra.mxu1 %v633_v38  ;;  %v1455_v36 = vld [vmem:[%s2714_s5 + $0x330] sm:$0xff]  ;;  %v1422_v38 = vld [vmem:[%s2714_s5 + $0x228] sm:$0xff] }
  0xd2   : > { %889 = vmatpush.msra.mxu3 %v1444_v11  ;;  %969 = vmatpush.msrb.mxu1 %v1476_v17  ;;  %v1528_v11 = vld [vmem:[%s2714_s5 + $0x578] sm:$0xff]  ;;  %v1494_v17 = vld [vmem:[%s2714_s5 + $0x468] sm:$0xff] }
  0xd3   : > { %933 = vmatpush.msrb.mxu0 %v1456_v32  ;;  %855 = vmatpush.msra.mxu2 %v1422_v38  ;;  %v1540_v32 = vld [vmem:[%s2714_s5 + $0x5d8] sm:$0xff]  ;;  %v1490_v38 = vld [vmem:[%s2714_s5 + $0x448] sm:$0xff] }
  0xd4   : > { %890 = vmatpush.msra.mxu3 %v1443_v15  ;;  %970 = vmatpush.msrb.mxu1 %v1475_v21  ;;  %v1527_v15 = vld [vmem:[%s2714_s5 + $0x570] sm:$0xff] }
  0xd5   : > { %934 = vmatpush.msrb.mxu0 %v1455_v36  ;;  %856 = vmatpush.msra.mxu2 %v1421_v42  ;;  %v1538_v42 = vld [vmem:[%s2714_s5 + $0x5c8] sm:$0xff] }
  0xd6   : > { %891 = vmatpush.msra.mxu3 %v1442_v19  ;;  %971 = vmatpush.msrb.mxu1 %v1474_v25  ;;  %v1526_v19 = vld [vmem:[%s2714_s5 + $0x568] sm:$0xff]  ;;  %v1541_v25 = vld [vmem:[%s2714_s5 + $0x5e0] sm:$0xff] }
  0xd7   : > { %935 = vmatpush.msrb.mxu0 %v1454_v40  ;;  %857 = vmatpush.msra.mxu2 %v1420_v46  ;;  %v1522_v40 = vld [vmem:[%s2714_s5 + $0x548] sm:$0xff]  ;;  %v1521_v46 = vld [vmem:[%s2714_s5 + $0x540] sm:$0xff] }
  0xd8   : > { %892 = vmatpush.msra.mxu3 %v1441_v23  ;;  %972 = vmatpush.msrb.mxu1 %v1473_v29  ;;  %v1508_v23 = vld [vmem:[%s2714_s5 + $0x4d8] sm:$0xff] }
  0xd9   : > { %936 = vmatpush.msrb.mxu0 %v1453_v44  ;;  %858 = vmatpush.msra.mxu2 %v1419_v50  ;;  %v1520_v50 = vld [vmem:[%s2714_s5 + $0x538] sm:$0xff] }
  0xda   : > { %893 = vmatpush.msra.mxu3 %v1440_v27  ;;  %973 = vmatpush.msrb.mxu1 %v1472_v33  ;;  %v1491_v33 = vld [vmem:[%s2714_s5 + $0x450] sm:$0xff] }
  0xdb   : > { %937 = vmatpush.msrb.mxu0 %v1452_v48  ;;  %859 = vmatpush.msra.mxu2 %v1418_v54  ;;  %v1488_v48 = vld [vmem:[%s2714_s5 + $0x438] sm:$0xff] }
  0xdc   : > { %894 = vmatpush.msra.mxu3 %v1439_v31  ;;  %974 = vmatpush.msrb.mxu1 %v1471_v37  ;;  %v1524_v31 = vld [vmem:[%s2714_s5 + $0x558] sm:$0xff]  ;;  %v1539_v37 = vld [vmem:[%s2714_s5 + $0x5d0] sm:$0xff] }
  0xdd   : > { %938 = vmatpush.msrb.mxu0 %v1451_v52  ;;  %860 = vmatpush.msra.mxu2 %v1417_v58  ;;  %v1536_v52 = vld [vmem:[%s2714_s5 + $0x5b8] sm:$0xff]  ;;  %v1486_v58 = vld [vmem:[%s2714_s5 + $0x428] sm:$0xff] }
  0xde   : > { %895 = vmatpush.msra.mxu3 %v1438_v35  ;;  %975 = vmatpush.msrb.mxu1 %v1470_v41  ;;  %v1523_v35 = vld [vmem:[%s2714_s5 + $0x550] sm:$0xff] }
  0xdf   : > { %939 = vmatpush.msrb.mxu0 %v1450_v56  ;;  %v1519_v56 = vld [vmem:[%s2714_s5 + $0x530] sm:$0xff] }
  0xe0   : > { %896 = vmatpush.msra.mxu3 %v1437_v39  ;;  %976 = vmatpush.msrb.mxu1 %v1469_v45  ;;  %v1505_v39 = vld [vmem:[%s2714_s5 + $0x4c0] sm:$0xff]  ;;  %v1504_v45 = vld [vmem:[%s2714_s5 + $0x4b8] sm:$0xff] }
  0xe1   : > { %940 = vmatpush.msrb.mxu0 %v1449_v59  ;;  %v1501_v59 = vld [vmem:[%s2714_s5 + $0x4a0] sm:$0xff] }
  0xe2   : > { %897 = vmatpush.msra.mxu3 %v1436_v43  ;;  %977 = vmatpush.msrb.mxu1 %v1468_v49  ;;  %v1489_v43 = vld [vmem:[%s2714_s5 + $0x440] sm:$0xff]  ;;  %v1503_v49 = vld [vmem:[%s2714_s5 + $0x4b0] sm:$0xff] }
  0xe4   : > { %898 = vmatpush.msra.mxu3 %v1435_v47  ;;  %978 = vmatpush.msrb.mxu1 %v1467_v53  ;;  %v1537_v47 = vld [vmem:[%s2714_s5 + $0x5c0] sm:$0xff]  ;;  %v1487_v53 = vld [vmem:[%s2714_s5 + $0x430] sm:$0xff] }
  0xe6   : > { %899 = vmatpush.msra.mxu3 %v1434_v51  ;;  %979 = vmatpush.msrb.mxu1 %v1466_v57  ;;  %v1535_v57 = vld [vmem:[%s2714_s5 + $0x5b0] sm:$0xff] }
  0xe8   : > { %900 = vmatpush.msra.mxu3 %v1433_v55  ;;  %980 = vmatpush.msrb.mxu1 %v1465_v60  ;;  %v1502_v55 = vld [vmem:[%s2714_s5 + $0x4a8] sm:$0xff] }
  0xe9   : > { %v1518_v60 = vld [vmem:[%s2714_s5 + $0x528] sm:$0xff] }
 0x13b   : > { %v609_v61 = vpop.f32.mrf.mxu0 }
 0x143   : > { %v612_v41 = vpop.f32.mrf.mxu0 }
 0x146   : > { %v654_v1 = vpop.f32.mrf.mxu1 }
 0x14c   : > { %v586_v62 = vpop.f32.mrf.mxu3 }
 0x14d   : > { %v610_v63 = vadd.f32 %v609_v61, %v586_v62  ;;  %v1534_v61 = vld [vmem:[%s2714_s5 + $0x5a8] sm:$0xff]  ;;  %v1485_v62 = vld [vmem:[%s2714_s5 + $0x420] sm:$0xff] }
 0x14e   : > { %v657_v51 = vpop.f32.mrf.mxu1 }
 0x14f   : > { %v660_v2 = vadd.f32 %v654_v1, %v610_v63  ;;  %v1500_v1 = vld [vmem:[%s2714_s5 + $0x498] sm:$0xff] }
 0x151   : > { %v666_v3 = vadd.f32 %v2454_v0, %v660_v2  ;;  %v1517_v2 = vld [vmem:[%s2714_s5 + $0x520] sm:$0xff] }
 0x153   : > { %v668_v4 = vmax.f32 %v666_v3, 0.0  ;;  %v1533_v3 = vld [vmem:[%s2714_s5 + $0x5a0] sm:$0xff] }
 0x154   : > { %v589_v36 = vpop.f32.mrf.mxu3 }
 0x155   : > { %742 = vmatmul.f32.vlgmr.msrb.gmra.mxu3 %v668_v4  ;;  %v704_v6 = vrot.slane %v668_v4, 1  ;;  %v763_v7 = vrot.slane %v668_v4, 2  ;;  %v803_v8 = vrot.slane %v668_v4, 3  ;;  %v883_v21 = vrot.slane %v668_v4, 5 }
 0x156   : > { %1044 = vmatpush.msrb.mxu3 %v1512_v5  ;;  %v843_v26 = vrot.slane %v668_v4, 4  ;;  %v923_v27 = vrot.slane %v668_v4, 6  ;;  %v963_v29 = vrot.slane %v668_v4, 7  ;;  %v613_v44 = vadd.f32 %v612_v41, %v589_v36  ;;  %v1499_v4 = vld [vmem:[%s2714_s5 + $0x490] sm:$0xff]  ;;  %v1516_v5 = vld [vmem:[%s2714_s5 + $0x518] sm:$0xff] }
 0x157   : > { %722 = vmatmul.f32.vlgmr.msrb.gmra.mxu2 %v704_v6  ;;  %781 = vmatmul.f32.vlgmr.msra.gmra.mxu0 %v763_v7  ;;  %v1532_v6 = vld [vmem:[%s2714_s5 + $0x598] sm:$0xff]  ;;  %v1483_v7 = vld [vmem:[%s2714_s5 + $0x410] sm:$0xff] }
 0x158   : > { %821 = vmatmul.f32.vlgmr.msra.gmra.mxu1 %v803_v8  ;;  %1003 = vmatpush.msrb.mxu2 %v1496_v9  ;;  %v661_v54 = vadd.f32 %v657_v51, %v613_v44  ;;  %v1498_v9 = vld [vmem:[%s2714_s5 + $0x488] sm:$0xff] }
 0x159   : > { %1045 = vmatpush.msrb.mxu3 %v1511_v10  ;;  %1084 = vmatpush.msra.mxu0 %v1528_v11  ;;  %v1515_v10 = vld [vmem:[%s2714_s5 + $0x510] sm:$0xff] }
 0x15a   : > { %1124 = vmatpush.msra.mxu1 %v1544_v12  ;;  %1004 = vmatpush.msrb.mxu2 %v1495_v13  ;;  %v667_v63 = vadd.f32 %v2454_v0, %v661_v54  ;;  %v1484_v0 = vld [vmem:[%s2714_s5 + $0x418] sm:$0xff]  ;;  %v1531_v11 = vld [vmem:[%s2714_s5 + $0x590] sm:$0xff]  ;;  %v1482_v12 = vld [vmem:[%s2714_s5 + $0x408] sm:$0xff] }
 0x15b   : > { %1046 = vmatpush.msrb.mxu3 %v1510_v14  ;;  %1085 = vmatpush.msra.mxu0 %v1527_v15  ;;  %v1497_v13 = vld [vmem:[%s2714_s5 + $0x480] sm:$0xff]  ;;  %v1514_v14 = vld [vmem:[%s2714_s5 + $0x508] sm:$0xff] }
 0x15c   : > { %1125 = vmatpush.msra.mxu1 %v1543_v16  ;;  %1005 = vmatpush.msrb.mxu2 %v1494_v17  ;;  %v669_v8 = vmax.f32 %v667_v63, 0.0  ;;  %v1530_v15 = vld [vmem:[%s2714_s5 + $0x588] sm:$0xff]  ;;  %v1481_v17 = vld [vmem:[%s2714_s5 + $0x400] sm:$0xff] }
 0x15d   : > { %1047 = vmatpush.msrb.mxu3 %v1509_v18  ;;  %1086 = vmatpush.msra.mxu0 %v1526_v19  ;;  %v1513_v18 = vld [vmem:[%s2714_s5 + $0x500] sm:$0xff] }
 0x15e   : > { %1126 = vmatpush.msra.mxu1 %v1542_v20  ;;  %901 = vmatmul.f32.vlgmr.msra.gmra.mxu3 %v883_v21  ;;  %v1042_v16 = vrot.slane %v669_v8, 1  ;;  %v1529_v19 = vld [vmem:[%s2714_s5 + $0x580] sm:$0xff]  ;;  %v1082_v20 = vrot.slane %v669_v8, 2  ;;  %v1122_v21 = vrot.slane %v669_v8, 3 }
 0x15f   : > { %1006 = vmatpush.msrb.mxu2 %v1493_v22  ;;  %1048 = vmatpush.msrb.mxu3 %v1508_v23  ;;  %v1151_v23 = vld [vmem:[%s2716_s7 + $0x18] sm:$0xff]  ;;  %v1152_v54 = vld [vmem:[%s2717_s8] sm:$0x1] }
 0x160   : > { %1087 = vmatpush.msra.mxu0 %v1525_v24  ;;  %1127 = vmatpush.msra.mxu1 %v1541_v25  ;;  %v1150_v25 = vld [vmem:[%s2716_s7 + $0x10] sm:$0xff] }
 0x161   : > { %861 = vmatmul.f32.vlgmr.msra.gmra.mxu2 %v843_v26  ;;  %941 = vmatmul.f32.vlgmr.msrb.gmra.mxu0 %v923_v27  ;;  %v1149_v27 = vld [vmem:[%s2716_s7 + $0x8] sm:$0xff] }
 0x162   : > { %981 = vmatmul.f32.vlgmr.msrb.gmra.mxu1 %v963_v29  ;;  %1007 = vmatpush.msrb.mxu2 %v1492_v28  ;;  %v1148_v28 = vld [vmem:[%s2716_s7] sm:$0xff] }
 0x163   : > { %1049 = vmatpush.msrb.mxu3 %v1507_v30  ;;  %1088 = vmatpush.msra.mxu0 %v1524_v31  ;;  %v1179_v31 = vld [vmem:[%s2718_s9 + $0x8] sm:$0xff] }
 0x164   : > { %1128 = vmatpush.msra.mxu1 %v1540_v32  ;;  %1008 = vmatpush.msrb.mxu2 %v1491_v33 }
 0x165   : > { %1050 = vmatpush.msrb.mxu3 %v1506_v34  ;;  %1089 = vmatpush.msra.mxu0 %v1523_v35 }
 0x166   : > { %1129 = vmatpush.msra.mxu1 %v1539_v37  ;;  %1009 = vmatpush.msrb.mxu2 %v1490_v38 }
 0x167   : > { %1051 = vmatpush.msrb.mxu3 %v1505_v39  ;;  %1090 = vmatpush.msra.mxu0 %v1522_v40 }
 0x168   : > { %1130 = vmatpush.msra.mxu1 %v1538_v42  ;;  %1010 = vmatpush.msrb.mxu2 %v1489_v43 }
 0x169   : > { %1052 = vmatpush.msrb.mxu3 %v1504_v45  ;;  %1091 = vmatpush.msra.mxu0 %v1521_v46 }
 0x16a   : > { %1131 = vmatpush.msra.mxu1 %v1537_v47  ;;  %1011 = vmatpush.msrb.mxu2 %v1488_v48 }
 0x16b   : > { %1053 = vmatpush.msrb.mxu3 %v1503_v49  ;;  %1092 = vmatpush.msra.mxu0 %v1520_v50  ;;  %v1145_v49 = vld [vmem:[%s2715_s6] sm:$0x1] }
 0x16c   : > { %1132 = vmatpush.msra.mxu1 %v1536_v52  ;;  %1012 = vmatpush.msrb.mxu2 %v1487_v53  ;;  %v1178_v53 = vld [vmem:[%s2718_s9] sm:$0xff] }
 0x16d   : > { %1054 = vmatpush.msrb.mxu3 %v1502_v55  ;;  %1093 = vmatpush.msra.mxu0 %v1519_v56 }
 0x16e   : > { %1133 = vmatpush.msra.mxu1 %v1535_v57  ;;  %1013 = vmatpush.msrb.mxu2 %v1486_v58  ;;  %v1180_v58 = vld [vmem:[%s2719_s10] sm:$0x1] }
 0x16f   : > { %1055 = vmatpush.msrb.mxu3 %v1501_v59  ;;  %1094 = vmatpush.msra.mxu0 %v1518_v60 }
 0x170   : > { %1134 = vmatpush.msra.mxu1 %v1534_v61  ;;  %1014 = vmatpush.msrb.mxu2 %v1485_v62 }
 0x171   : > { %1056 = vmatpush.msrb.mxu3 %v1500_v1  ;;  %1095 = vmatpush.msra.mxu0 %v1517_v2 }
 0x172   : > { %1135 = vmatpush.msra.mxu1 %v1533_v3  ;;  %1015 = vmatpush.msrb.mxu2 %v1484_v0 }
 0x173   : > { %1057 = vmatpush.msrb.mxu3 %v1499_v4  ;;  %1096 = vmatpush.msra.mxu0 %v1516_v5 }
 0x174   : > { %1136 = vmatpush.msra.mxu1 %v1532_v6  ;;  %1016 = vmatpush.msrb.mxu2 %v1483_v7 }
 0x175   : > { %1058 = vmatpush.msrb.mxu3 %v1498_v9  ;;  %1097 = vmatpush.msra.mxu0 %v1515_v10 }
 0x176   : > { %1137 = vmatpush.msra.mxu1 %v1531_v11  ;;  %1017 = vmatpush.msrb.mxu2 %v1482_v12 }
 0x177   : > { %1059 = vmatpush.msrb.mxu3 %v1497_v13  ;;  %1098 = vmatpush.msra.mxu0 %v1514_v14 }
 0x178   : > { %1138 = vmatpush.msra.mxu1 %v1530_v15  ;;  %1060 = vmatmul.f32.vlgmr.msrb.gmra.mxu3 %v1042_v16 }
 0x179   : > { %1018 = vmatpush.msrb.mxu2 %v1481_v17  ;;  %1099 = vmatpush.msra.mxu0 %v1513_v18 }
 0x17a   : > { %1139 = vmatpush.msra.mxu1 %v1529_v19  ;;  %1019 = vmatmul.f32.vlgmr.msrb.gmra.mxu2 %v669_v8 }
 0x17b   : > { %1100 = vmatmul.f32.vlgmr.msra.gmra.mxu0 %v1082_v20  ;;  %1140 = vmatmul.f32.vlgmr.msra.gmra.mxu1 %v1122_v21 }
 0x17c   : > { %1169 = vmatpush.msra.mxu2 %v1151_v23  ;;  %1199 = vmatpush.msra.mxu3 %v1179_v31 }
 0x17e   : > { %1170 = vmatpush.msra.mxu2 %v1150_v25  ;;  %1200 = vmatpush.msra.mxu3 %v1178_v53 }
 0x180   : > { %1171 = vmatpush.msra.mxu2 %v1149_v27 }
 0x182   : > { %1172 = vmatpush.msra.mxu2 %v1148_v28 }
 0x1d4   : > { %v782_v29 = vpop.f32.mrf.mxu0 }
 0x1d5   : > { %v822_v32 = vpop.f32.mrf.mxu1 }
 0x1d8   : > { %v743_v24 = vpop.f32.mrf.mxu3 }
 0x1da   : > { %v723_v22 = vpop.f32.mrf.mxu2 }
 0x1db   : > { %v744_v26 = vadd.f32 %v743_v24, %v723_v22 }
 0x1dd   : > { %v785_v30 = vadd.f32 %v782_v29, %v744_v26 }
 0x1de   : > { %v942_v38 = vpop.f32.mrf.mxu0 }
 0x1df   : > { %v825_v34 = vadd.f32 %v822_v32, %v785_v30  ;;  %v982_v40 = vpop.f32.mrf.mxu1 }
 0x1e1   : > { %v902_v36 = vpop.f32.mrf.mxu3 }
 0x1e4   : > { %v862_v33 = vpop.f32.mrf.mxu2 }
 0x1e5   : > { %v865_v35 = vadd.f32 %v862_v33, %v825_v34 }
 0x1e7   : > { %v905_v37 = vadd.f32 %v902_v36, %v865_v35 }
 0x1e9   : > { %v945_v39 = vadd.f32 %v942_v38, %v905_v37 }
 0x1eb   : > { %v985_v41 = vadd.f32 %v982_v40, %v945_v39 }
 0x1f8   : > { %v1101_v46 = vpop.f32.mrf.mxu0  ;;  %v1141_v48 = vpop.f32.mrf.mxu1 }
 0x1fb   : > { %v1061_v44 = vpop.f32.mrf.mxu3 }
 0x1fd   : > { %v1020_v42 = vpop.f32.mrf.mxu2 }
 0x1fe   : > { %v1023_v43 = vadd.f32 %v1020_v42, %v985_v41 }
 0x200   : > { %v1064_v45 = vadd.f32 %v1061_v44, %v1023_v43 }
 0x202   : > { %v1104_v47 = vadd.f32 %v1101_v46, %v1064_v45 }
 0x204   : > { %v1144_v50 = vadd.f32 %v1141_v48, %v1104_v47 }
 0x206   : > { %v1146_v51 = vadd.f32 %v1145_v49, %v1144_v50 }
 0x208   : > { %v1147_v52 = vmax.f32 %v1146_v51, 0.0 }
 0x20a   : > { %1545 = vmatmul.msk.f32.vlgmr.msra.gmra.mxu2 %vm1153_vm2, %v1147_v52 }
 0x28d   : > { %v1174_v55 = vpop.f32.mrf.mxu2 }
 0x28e   : > { %v1175_v56 = vadd.f32 %v1174_v55, %v1152_v54 }
 0x290   : > { %v1177_v57 = vmax.f32 %v1175_v56, 0.0 }
 0x292   : > { %1546 = vmatmul.msk.f32.vlgmr.msra.gmra.mxu3 %vm1181_vm3, %v1177_v57 }
 0x315   : > { %v1202_v59 = vpop.f32.mrf.mxu3 }
 0x316   : > { %v1203_v60 = vadd.f32 %v1202_v59, %v1180_v58 }
 0x318   : > { %v1206_v61 = vsel %vm1205_vm4, %v1203_v60, -inf }
 0x319   : > { %1207 = vmax.xlane.f32.xlu0 %v1206_v61 }
 0x38c   : > { %v1208_v62 = vpop.xlane.xlu0 %1207 }
 0x38d   : > { %v1209_v63 = vsub.f32 %v1203_v60, %v1208_v62 }
 0x38f   : > { %v1210_v1 = vmul.f32 1.442695, %v1209_v63 }
 0x391   : > { %1591 = vpow2.f32 %v1210_v1 }
 0x397   : > { %v1592_v2 = vpop.eup %1591 }
 0x398   : > { %v1212_v3 = vsel %vm1205_vm4, %v1592_v2, 0.0 }
 0x399   : > { %1213 = vadd.xlane.f32.xlu0 %v1212_v3 }
 0x40c   : > { %v1214_v0 = vpop.xlane.xlu0 %1213 }
 0x40d   : > { %1593 = vrcp.f32 %v1214_v0  ;;  %v1226_v7 = vand.u32 2147483648, %v1214_v0  ;;  %v1224_v9 = vand.u32 2147483647, %v1214_v0  ;;  %vm1220_vm6 = vweird.f32 %v1214_v0 }
 0x40f   : > { %v1227_v11 = vor.u32 1.1754944e-38, %v1226_v7  ;;  %vm1225_vm8 = vcmp.eq.f32.partialorder %v1224_v9, 8.507059e+37 }
 0x413   : > { %v1594_v4 = vpop.eup %1593 }
 0x414   : > { %v1216_v5 = vmul.f32 %v1594_v4, %v1214_v0  ;;  %vm1221_vm5 = vweird.f32 %v1594_v4 }
 0x415   : > { %vm1222_vm7 = vmor %vm1220_vm6, %vm1221_vm5 }
 0x416   : > { %v1217_v6 = vsub.f32 1.0, %v1216_v5 }
 0x418   : > { %v1218_v8 = vmul.f32 %v1594_v4, %v1217_v6 }
 0x41a   : > { %v1219_v10 = vadd.f32 %v1594_v4, %v1218_v8 }
 0x41c   : > { %v1223_v12 = vsel %vm1222_vm7, %v1594_v4, %v1219_v10 }
 0x41d   : > { %v1228_v13 = vsel %vm1225_vm8, %v1227_v11, %v1223_v12 }
 0x41e   : > { %v1229_v14 = vmul.f32 %v1592_v2, %v1228_v13 }
 0x420   : > { %1230 = vst [vmem:[%s378_s22] sm:$0x1] %v1229_v14 }
 0x421   : > { %1622 = shalt.err (!%p1619_p3)
}
 0x422   : > { %1550 = dma.vmem_to_hbm [thread:$0]  (%p1757_p5), %s1243_s25, 16, %s1245_s24, %s1232_s26  }
 0x423 PF: > { %p1556_p4 = scmp.ge.s32.totalorder %s1657_s20, 2  ;;  %s1256_s13 = sand.u32 1, %s1645_s17  }
 0x424   : > { %s1257_s16 = scalar_lea.sflag [#allocation3], %s1256_s13 }
 0x425   : > { %p1553_p7 = pnand %p1556_p4, %p1761_p6 }
 0x427   : > { %p1554_p8 = pneg %p1553_p7 }
 0x429   : > { %1640 = dma.done.wait (%p1554_p8), %s1257_s16, 16  }
 0x42a   : > { %1642 = vsyncadd (%p1554_p8), %s1257_s16, 4294967280  ;;  %s2726_s22 = sld [smem:[#allocation5_spill]]  ;;  %p21_p9 = scmp.ge.s32.totalorder %s1744_s23, 4  }
 0x42b   : > { %s2727_s19 = sld [smem:[#allocation6_spill]]  ;;  %s2728_s17 = smov %s1649_s18 }
 0x42c   : > { %s2730_s20 = smov %s1744_s23  ;;  %23 = sbr.rel (!%p21_p9) target bundleno = 3 (0x3), region = 114 }
 0x430   : > { %s2729_s18 = smov %s2726_s22 }
 0x431   :  { %1262 = vsyncpa [#allocation3], 1 }
 0x432   :  { %1264 = vsyncpa [#allocation3 + $0x1], 1 }

</bundles_post_ra>
